<compile_context>
chip_gen: v5e
topology: v5e:2x2
jax: 0.10.0
libtpu: 0.0.40
codegen_flags: <defaults>
</compile_context>

<pallas_src>
import math

import jax
import jax.numpy as jnp
import numpy as np
from jax import lax
from jax.experimental import pallas as pl
from jax.experimental.pallas import tpu as pltpu

D_MODEL = 10       # feature_size
N_HEAD = 2
HEAD_DIM = D_MODEL // N_HEAD
FF_DIM = 2048      # nn.TransformerEncoderLayer default dim_feedforward
IN_FEAT = 3        # self.trans = nn.Linear(3, 10)
MAX_LEN = 168
EPS = 1e-5


def _layernorm(x, w, b):
    mu = jnp.mean(x, axis=-1, keepdims=True)
    var = jnp.mean((x - mu) ** 2, axis=-1, keepdims=True)
    return (x - mu) * lax.rsqrt(var + EPS) * w + b


# -----------------------------------------------------------------------------
# Kernel: one batch tile (B_TILE elements) per grid step.
#   src_ref  : (B_TILE, S, 3)      srcl_ref : (B_TILE, 3)  (last position only)
#   padb_ref : (B_TILE, 1, S)      additive key-padding bias (0 / -1e30)
#   kvw_ref  : (3, 2D)             kvb_ref  : (S, 2D)      fused trans->K|V
#   lastw_ref: (3, D)              wq_ref   : (D, 2D)      Q (scaled, extended)
#   wo_ref   : (2D, D)             out-proj shifted onto the V lanes
#   w1_ref   : (D, FF)  b1_ref : (1, FF)  w2_ref : (FF, D)
#   c2d_ref  : (1+2H, 2D)  rows: [bq_ext, hm_q (H), hm_v (H)]
#   cd_ref   : (9, D)      rows: [xlast_b, bo, n1w, n1b, n2w, n2b, b2, dec_w, dec_b@lane0]
#   out_ref  : (B_TILE, 1)
# -----------------------------------------------------------------------------
def transam_kernel(src_ref, srcl_ref, padb_ref,
                   kvw_ref, kvb_ref, lastw_ref, wq_ref, wo_ref,
                   w1_ref, b1_ref, w2_ref, c2d_ref, cd_ref,
                   out_ref):
    Bt, S, F = src_ref.shape
    D2 = kvw_ref.shape[1]          # 2 * D_MODEL

    cd = cd_ref[...]               # (9, D) packed small constants
    c2d = c2d_ref[...]             # (1+2H, 2D)

    # Fused input-Linear -> [K | V] for the full sequence, all batches at once.
    kvw = jnp.broadcast_to(kvw_ref[...][None, :, :], (Bt, F, D2))
    kv = (jnp.einsum('bsf,bfd->bsd', src_ref[...], kvw,
                     preferred_element_type=jnp.float32)
          + kvb_ref[...][None, :, :])                              # (Bt, S, 2D)

    # Last position only for the rest of the layer (output consumes output[-1]).
    x_last = (jnp.dot(srcl_ref[...], lastw_ref[...],
                      preferred_element_type=jnp.float32) + cd[0:1, :])   # (Bt, D)
    q_ext = (jnp.dot(x_last, wq_ref[...],
                     preferred_element_type=jnp.float32) + c2d[0:1, :])   # (Bt, 2D)

    hm_q = c2d[1:1 + N_HEAD, :]                 # (H, 2D) query-head lane masks
    hm_v = c2d[1 + N_HEAD:1 + 2 * N_HEAD, :]    # (H, 2D) value-head lane masks

    # scores[b, h, s] = <q_h, k_h[s]>  (qh is zero outside head h's K lanes)
    qh = q_ext[:, None, :] * hm_q[None, :, :]                       # (Bt, H, 2D)
    sc = jnp.einsum('bhd,bsd->bhs', qh, kv,
                    preferred_element_type=jnp.float32)             # (Bt, H, S)
    sc = sc + padb_ref[...]                                         # key_padding bias
    sc = sc - jnp.max(sc, axis=-1, keepdims=True)
    pr = jnp.exp(sc)
    pr = pr * pl.reciprocal(jnp.sum(pr, axis=-1, keepdims=True), approx=True)

    ctx = jnp.einsum('bhs,bsd->bhd', pr, kv,
                     preferred_element_type=jnp.float32)            # (Bt, H, 2D)
    # keep each head's own V lanes, sum heads -> concatenated head output in the V lanes
    o = jnp.sum(ctx * hm_v[None, :, :], axis=1)                     # (Bt, 2D)
    attn = jnp.dot(o, wo_ref[...], preferred_element_type=jnp.float32) + cd[1:2, :]

    # residual + norm1 (post-norm)
    y = _layernorm(x_last + attn, cd[2:3, :], cd[3:4, :])           # (Bt, D)

    # feed-forward (last position only, batched over the tile)
    h1 = jnp.maximum(
        jnp.dot(y, w1_ref[...], preferred_element_type=jnp.float32) + b1_ref[...], 0.0)
    ff = jnp.dot(h1, w2_ref[...], preferred_element_type=jnp.float32) + cd[6:7, :]

    # residual + norm2
    z = _layernorm(y + ff, cd[4:5, :], cd[5:6, :])

    # decoder: Linear(10, 1) as an elementwise mul + lane reduction (no tiny matmul)
    out_ref[...] = (jnp.sum(z * cd[7:8, :], axis=-1, keepdims=True)
                    + cd[8:9, 0:1])


def make_positional_encoding(max_len=MAX_LEN, d_model=D_MODEL):
    position = jnp.arange(max_len, dtype=jnp.float32)[:, None]
    div_term = jnp.exp(jnp.arange(0, d_model, 2, dtype=jnp.float32)
                       * (-math.log(10000.0) / d_model))
    ang = position * div_term
    pe = jnp.zeros((max_len, d_model), jnp.float32)
    pe = pe.at[:, 0::2].set(jnp.sin(ang))
    pe = pe.at[:, 1::2].set(jnp.cos(ang))
    return pe


def init_params(key):
    ks = jax.random.split(key, 10)
    u = lambda k, shape, r: jax.random.uniform(k, shape, jnp.float32, -r, r)

    trans_w = u(ks[0], (D_MODEL, IN_FEAT), 1.0 / math.sqrt(IN_FEAT))
    trans_b = u(ks[1], (D_MODEL,), 1.0 / math.sqrt(IN_FEAT))
    in_proj_w = u(ks[2], (3 * D_MODEL, D_MODEL), 1.0 / math.sqrt(D_MODEL))
    in_proj_b = jnp.zeros((3 * D_MODEL,), jnp.float32)
    out_w = u(ks[3], (D_MODEL, D_MODEL), 1.0 / math.sqrt(D_MODEL))
    out_b = jnp.zeros((D_MODEL,), jnp.float32)
    w1 = u(ks[4], (FF_DIM, D_MODEL), 1.0 / math.sqrt(D_MODEL))
    b1 = u(ks[5], (FF_DIM,), 1.0 / math.sqrt(D_MODEL))
    w2 = u(ks[6], (D_MODEL, FF_DIM), 1.0 / math.sqrt(FF_DIM))
    b2 = u(ks[7], (D_MODEL,), 1.0 / math.sqrt(FF_DIM))
    dec_w = u(ks[8], (1, D_MODEL), 0.1)        # init_weights(): uniform(-0.1, 0.1)
    dec_b = jnp.zeros((1,), jnp.float32)       # init_weights(): zero

    wq, wk, wv = in_proj_w[:D_MODEL], in_proj_w[D_MODEL:2 * D_MODEL], in_proj_w[2 * D_MODEL:]
    bq, bk, bv = in_proj_b[:D_MODEL], in_proj_b[D_MODEL:2 * D_MODEL], in_proj_b[2 * D_MODEL:]

    def row(v):
        return v.reshape(1, -1)

    return dict(
        pe=make_positional_encoding(),
        trans_wT=trans_w.T, trans_b=row(trans_b),
        wqT=wq.T, bq=row(bq), wkT=wk.T, bk=row(bk), wvT=wv.T, bv=row(bv),
        woT=out_w.T, bo=row(out_b),
        n1w=row(jnp.ones((D_MODEL,), jnp.float32)), n1b=row(jnp.zeros((D_MODEL,), jnp.float32)),
        n2w=row(jnp.ones((D_MODEL,), jnp.float32)), n2b=row(jnp.zeros((D_MODEL,), jnp.float32)),
        w1T=w1.T, b1=row(b1), w2T=w2.T, b2=row(b2),
        decT=dec_w.T, dec_b=row(dec_b),
    )


def _pack_operands(p, S):
    """Offline weight fusion / packing (runs once in plain JAX, outside the kernel)."""
    D, H, HD = D_MODEL, N_HEAD, HEAD_DIM
    scale = 1.0 / math.sqrt(HD)

    pe = p['pe'][:S]                                   # (S, D)
    pe_b = p['trans_b'] + pe                           # (S, D)  trans bias + pos. enc.

    # Fuse the input Linear(3,10) into K/V:  kv = src @ kv_w + kv_b  -> [K | V]
    wkv = jnp.concatenate([p['wkT'], p['wvT']], axis=1)            # (D, 2D)
    bkv = jnp.concatenate([p['bk'], p['bv']], axis=1)              # (1, 2D)
    kv_w = p['trans_wT'] @ wkv                                     # (3, 2D)
    kv_b = pe_b @ wkv + bkv                                        # (S, 2D)

    # Q with 1/sqrt(head_dim) folded in, placed in the K lanes of the 2D layout.
    wq_ext = jnp.concatenate([p['wqT'] * scale,
                              jnp.zeros((D, D), jnp.float32)], axis=1)   # (D, 2D)
    bq_ext = jnp.concatenate([p['bq'] * scale,
                              jnp.zeros((1, D), jnp.float32)], axis=1)   # (1, 2D)

    # Out-projection pre-shifted so it consumes the V lanes of the extended context.
    wo_ext = jnp.concatenate([jnp.zeros((D, D), jnp.float32), p['woT']], axis=0)  # (2D, D)

    # Head lane masks over the [K | V] lane layout.
    lane = jnp.arange(2 * D)
    head = jnp.arange(H)[:, None]
    hm_q = ((lane[None, :] < D) & ((lane[None, :] // HD) == head)).astype(jnp.float32)
    hm_v = ((lane[None, :] >= D) & (((lane[None, :] - D) // HD) == head)).astype(jnp.float32)
    c2d = jnp.concatenate([bq_ext, hm_q, hm_v], axis=0)            # (1+2H, 2D)

    dec_b_row = jnp.zeros((1, D), jnp.float32).at[0, 0].set(p['dec_b'][0, 0])
    cd = jnp.concatenate([pe_b[S - 1:S],                           # row 0: x_last bias
                          p['bo'],                                 # row 1
                          p['n1w'], p['n1b'], p['n2w'], p['n2b'],  # rows 2-5
                          p['b2'],                                 # row 6
                          p['decT'].T,                             # row 7: decoder weight row
                          dec_b_row], axis=0)                      # row 8: decoder bias @ lane 0

    return (kv_w, kv_b, p['trans_wT'], wq_ext, wo_ext,
            p['w1T'], p['b1'], p['w2T'], c2d, cd)


def transam_forward(src, src_padding, p):
    B, S, F = src.shape
    src = src.astype(jnp.float32)
    # key_padding_mask -> additive bias, precomputed outside the kernel
    pad_bias = jnp.where(src_padding != 0, jnp.float32(-1e30),
                         jnp.float32(0.0)).reshape(B, 1, S)

    # Batch tile: multiple of 8 (sublane aligned); keep >= 2 grid steps when B allows
    # so the batch axis can be split across v7x's two TensorCores.
    b_tile = 8 * pl.cdiv(max(1, pl.cdiv(B, 2)), 8)
    grid = pl.cdiv(B, b_tile)
    b_pad = grid * b_tile
    if b_pad != B:
        src = jnp.pad(src, ((0, b_pad - B), (0, 0), (0, 0)))
        pad_bias = jnp.pad(pad_bias, ((0, b_pad - B), (0, 0), (0, 0)))
    src_last = src[:, S - 1, :]                                    # (b_pad, F)

    consts = list(_pack_operands(p, S))

    def _const_spec(a):
        nd = a.ndim
        return pl.BlockSpec(a.shape, lambda g, _nd=nd: (0,) * _nd)  # resident across steps

    in_specs = ([pl.BlockSpec((b_tile, S, F), lambda g: (g, 0, 0)),   # per-tile src
                 pl.BlockSpec((b_tile, F), lambda g: (g, 0)),         # per-tile last row
                 pl.BlockSpec((b_tile, 1, S), lambda g: (g, 0, 0))]   # per-tile pad bias
                + [_const_spec(a) for a in consts])

    out = pl.pallas_call(
        transam_kernel,
        grid=(grid,),
        out_shape=jax.ShapeDtypeStruct((b_pad, 1), jnp.float32),
        in_specs=in_specs,
        out_specs=pl.BlockSpec((b_tile, 1), lambda g: (g, 0)),
        compiler_params=pltpu.CompilerParams(
            dimension_semantics=("parallel",)),
    )(src, src_last, pad_bias, *consts)

    # PyTorch: output[-1] over seq (after the (seq, batch) transpose), flatten -> (batch,)
    return out[:B, 0]


def reference_forward(src, src_padding, p):
    """Pure-JAX reference mirroring the PyTorch forward (eval semantics)."""
    B, S, _ = src.shape
    pe = p['pe'][:S]
    x = src @ p['trans_wT'] + p['trans_b']
    x = x + pe[None]
    scale = 1.0 / math.sqrt(HEAD_DIM)
    q = ((x @ p['wqT'] + p['bq']) * scale).reshape(B, S, N_HEAD, HEAD_DIM)
    k = (x @ p['wkT'] + p['bk']).reshape(B, S, N_HEAD, HEAD_DIM)
    v = (x @ p['wvT'] + p['bv']).reshape(B, S, N_HEAD, HEAD_DIM)
    sc = jnp.einsum('bshd,bthd->bhst', q, k)
    sc = sc + jnp.where(src_padding != 0, -1e30, 0.0)[:, None, None, :]
    pr = jax.nn.softmax(sc, axis=-1)
    oh = jnp.einsum('bhst,bthd->bshd', pr, v).reshape(B, S, D_MODEL)
    attn = oh @ p['woT'] + p['bo']
    y = _layernorm(x + attn, p['n1w'], p['n1b'])
    ff = jnp.maximum(y @ p['w1T'] + p['b1'], 0.0) @ p['w2T'] + p['b2']
    z = _layernorm(y + ff, p['n2w'], p['n2b'])
    dec = z @ p['decT'] + p['dec_b']
    return dec[:, -1, 0]


if __name__ == "__main__":
    key = jax.random.PRNGKey(0)
    k_src, k_param = jax.random.split(key)

    B, S = 16, 8
    src = jax.random.normal(k_src, (B, S, IN_FEAT), jnp.float32)
    # key_padding_mask: nonzero == padded/ignored; keep at least one valid key per batch
    src_padding = (jnp.zeros((B, S), jnp.float32)
                   .at[1, S - 2:].set(1.0)
                   .at[5, S - 3:].set(1.0))

    params = init_params(k_param)

    out = transam_forward(src, src_padding, params)
    out = jax.block_until_ready(out)

    ref = reference_forward(src, src_padding, params)
    np.testing.assert_allclose(np.asarray(out), np.asarray(ref), rtol=2e-3, atol=2e-3)

    print("KERNEL_OK")
</pallas_src>

<mosaic_0001>
module attributes {stable_mosaic.version = 11 : i64} {
  func.func @transam_kernel(%arg0: i32, %arg1: memref<8x8x3xf32, #tpu.memory_space<vmem>>, %arg2: memref<8x3xf32, #tpu.memory_space<vmem>>, %arg3: memref<8x1x8xf32, #tpu.memory_space<vmem>>, %arg4: memref<3x20xf32, #tpu.memory_space<vmem>>, %arg5: memref<8x20xf32, #tpu.memory_space<vmem>>, %arg6: memref<3x10xf32, #tpu.memory_space<vmem>>, %arg7: memref<10x20xf32, #tpu.memory_space<vmem>>, %arg8: memref<20x10xf32, #tpu.memory_space<vmem>>, %arg9: memref<10x2048xf32, #tpu.memory_space<vmem>>, %arg10: memref<1x2048xf32, #tpu.memory_space<vmem>>, %arg11: memref<2048x10xf32, #tpu.memory_space<vmem>>, %arg12: memref<5x20xf32, #tpu.memory_space<vmem>>, %arg13: memref<9x10xf32, #tpu.memory_space<vmem>>, %arg14: memref<8x1xf32, #tpu.memory_space<vmem>>) attributes {dimension_semantics = [#tpu.dimension_semantics<parallel>], iteration_bounds = array<i64: 2>, scalar_prefetch = 0 : i64, scratch_operands = 0 : i64, tpu.core_type = #tpu.core_type<tc>, window_params = [{transform_indices = @transform_0, window_bounds = array<i64: 8, 8, 3>}, {transform_indices = @transform_1, window_bounds = array<i64: 8, 3>}, {transform_indices = @transform_2, window_bounds = array<i64: 8, 1, 8>}, {pipeline_mode = #tpu.pipeline_mode<synchronous>, transform_indices = @transform_3, window_bounds = array<i64: 3, 20>}, {pipeline_mode = #tpu.pipeline_mode<synchronous>, transform_indices = @transform_4, window_bounds = array<i64: 8, 20>}, {pipeline_mode = #tpu.pipeline_mode<synchronous>, transform_indices = @transform_5, window_bounds = array<i64: 3, 10>}, {pipeline_mode = #tpu.pipeline_mode<synchronous>, transform_indices = @transform_6, window_bounds = array<i64: 10, 20>}, {pipeline_mode = #tpu.pipeline_mode<synchronous>, transform_indices = @transform_7, window_bounds = array<i64: 20, 10>}, {pipeline_mode = #tpu.pipeline_mode<synchronous>, transform_indices = @transform_8, window_bounds = array<i64: 10, 2048>}, {pipeline_mode = #tpu.pipeline_mode<synchronous>, transform_indices = @transform_9, window_bounds = array<i64: 1, 2048>}, {pipeline_mode = #tpu.pipeline_mode<synchronous>, transform_indices = @transform_10, window_bounds = array<i64: 2048, 10>}, {pipeline_mode = #tpu.pipeline_mode<synchronous>, transform_indices = @transform_11, window_bounds = array<i64: 5, 20>}, {pipeline_mode = #tpu.pipeline_mode<synchronous>, transform_indices = @transform_12, window_bounds = array<i64: 9, 10>}, {transform_indices = @transform_13, window_bounds = array<i64: 8, 1>}]} {
    %c0 = arith.constant 0 : index
    %c0_0 = arith.constant 0 : index
    %0 = vector.load %arg13[%c0, %c0_0] : memref<9x10xf32, #tpu.memory_space<vmem>>, vector<9x10xf32>
    %c0_1 = arith.constant 0 : index
    %c0_2 = arith.constant 0 : index
    %1 = vector.load %arg12[%c0_1, %c0_2] : memref<5x20xf32, #tpu.memory_space<vmem>>, vector<5x20xf32>
    %c0_3 = arith.constant 0 : index
    %c0_4 = arith.constant 0 : index
    %2 = vector.load %arg4[%c0_3, %c0_4] : memref<3x20xf32, #tpu.memory_space<vmem>>, vector<3x20xf32>
    %3 = vector.shape_cast %2 : vector<3x20xf32> to vector<1x3x20xf32>
    %4 = vector.shape_cast %3 : vector<1x3x20xf32> to vector<1x3x20xf32>
    %5 = vector.broadcast %4 : vector<1x3x20xf32> to vector<8x3x20xf32>
    %c0_5 = arith.constant 0 : index
    %c0_6 = arith.constant 0 : index
    %c0_7 = arith.constant 0 : index
    %6 = vector.load %arg1[%c0_5, %c0_6, %c0_7] : memref<8x8x3xf32, #tpu.memory_space<vmem>>, vector<8x8x3xf32>
    "tpu.trace_start"() <{level = 10 : i32, message = "bsf,bfd->bsd"}> : () -> ()
    %cst = arith.constant dense<0.000000e+00> : vector<8x8x20xf32>
    %7 = tpu.matmul %6, %5, %cst {dimension_numbers = #tpu.dot_dimension_numbers<[2], [1], [1], [2], [0, 0, 0, 1, 1, 2], [0], [0]>} : vector<8x8x3xf32>, vector<8x3x20xf32>, vector<8x8x20xf32> -> vector<8x8x20xf32>
    "tpu.trace_stop"() : () -> ()
    %c0_8 = arith.constant 0 : index
    %c0_9 = arith.constant 0 : index
    %8 = vector.load %arg5[%c0_8, %c0_9] : memref<8x20xf32, #tpu.memory_space<vmem>>, vector<8x20xf32>
    %9 = vector.shape_cast %8 : vector<8x20xf32> to vector<1x8x20xf32>
    %10 = vector.broadcast %9 : vector<1x8x20xf32> to vector<8x8x20xf32>
    %11 = arith.addf %7, %10 : vector<8x8x20xf32>
    %c0_10 = arith.constant 0 : index
    %c0_11 = arith.constant 0 : index
    %12 = vector.load %arg2[%c0_10, %c0_11] : memref<8x3xf32, #tpu.memory_space<vmem>>, vector<8x3xf32>
    %c0_12 = arith.constant 0 : index
    %c0_13 = arith.constant 0 : index
    %13 = vector.load %arg6[%c0_12, %c0_13] : memref<3x10xf32, #tpu.memory_space<vmem>>, vector<3x10xf32>
    %cst_14 = arith.constant dense<0.000000e+00> : vector<8x10xf32>
    %14 = tpu.matmul %12, %13, %cst_14 {dimension_numbers = #tpu.dot_dimension_numbers<[1], [0], [0], [1], [0, 0, 1, 1], [], []>} : vector<8x3xf32>, vector<3x10xf32>, vector<8x10xf32> -> vector<8x10xf32>
    %15 = vector.extract_strided_slice %0 {offsets = [0, 0], sizes = [1, 10], strides = [1, 1]} : vector<9x10xf32> to vector<1x10xf32>
    %16 = vector.broadcast %15 : vector<1x10xf32> to vector<8x10xf32>
    %17 = arith.addf %14, %16 : vector<8x10xf32>
    %c0_15 = arith.constant 0 : index
    %c0_16 = arith.constant 0 : index
    %18 = vector.load %arg7[%c0_15, %c0_16] : memref<10x20xf32, #tpu.memory_space<vmem>>, vector<10x20xf32>
    %cst_17 = arith.constant dense<0.000000e+00> : vector<8x20xf32>
    %19 = tpu.matmul %17, %18, %cst_17 {dimension_numbers = #tpu.dot_dimension_numbers<[1], [0], [0], [1], [0, 0, 1, 1], [], []>} : vector<8x10xf32>, vector<10x20xf32>, vector<8x20xf32> -> vector<8x20xf32>
    %20 = vector.extract_strided_slice %1 {offsets = [0, 0], sizes = [1, 20], strides = [1, 1]} : vector<5x20xf32> to vector<1x20xf32>
    %21 = vector.broadcast %20 : vector<1x20xf32> to vector<8x20xf32>
    %22 = arith.addf %19, %21 : vector<8x20xf32>
    %23 = vector.extract_strided_slice %1 {offsets = [1, 0], sizes = [2, 20], strides = [1, 1]} : vector<5x20xf32> to vector<2x20xf32>
    %24 = vector.extract_strided_slice %1 {offsets = [3, 0], sizes = [2, 20], strides = [1, 1]} : vector<5x20xf32> to vector<2x20xf32>
    %25 = vector.shape_cast %22 : vector<8x20xf32> to vector<8x1x20xf32>
    %26 = vector.shape_cast %23 : vector<2x20xf32> to vector<1x2x20xf32>
    %27 = vector.broadcast %25 : vector<8x1x20xf32> to vector<8x2x20xf32>
    %28 = vector.broadcast %26 : vector<1x2x20xf32> to vector<8x2x20xf32>
    %29 = arith.mulf %27, %28 : vector<8x2x20xf32>
    "tpu.trace_start"() <{level = 10 : i32, message = "bhd,bsd->bhs"}> : () -> ()
    %cst_18 = arith.constant dense<0.000000e+00> : vector<8x2x8xf32>
    %30 = tpu.matmul %29, %11, %cst_18 {dimension_numbers = #tpu.dot_dimension_numbers<[2], [2], [1], [1], [0, 0, 0, 1, 1, 1], [0], [0]>} : vector<8x2x20xf32>, vector<8x8x20xf32>, vector<8x2x8xf32> -> vector<8x2x8xf32>
    "tpu.trace_stop"() : () -> ()
    %c0_19 = arith.constant 0 : index
    %c0_20 = arith.constant 0 : index
    %c0_21 = arith.constant 0 : index
    %31 = vector.load %arg3[%c0_19, %c0_20, %c0_21] : memref<8x1x8xf32, #tpu.memory_space<vmem>>, vector<8x1x8xf32>
    %32 = vector.broadcast %31 : vector<8x1x8xf32> to vector<8x2x8xf32>
    %33 = arith.addf %30, %32 : vector<8x2x8xf32>
    %cst_22 = arith.constant dense<0xFF800000> : vector<8x2xf32>
    %34 = vector.multi_reduction <maximumf>, %33, %cst_22 [2] : vector<8x2x8xf32> to vector<8x2xf32>
    %35 = vector.shape_cast %34 : vector<8x2xf32> to vector<8x2x1xf32>
    %36 = vector.broadcast %35 : vector<8x2x1xf32> to vector<8x2x8xf32>
    %37 = arith.subf %33, %36 : vector<8x2x8xf32>
    %38 = math.exp %37 : vector<8x2x8xf32>
    %cst_23 = arith.constant dense<0.000000e+00> : vector<8x2xf32>
    %39 = vector.multi_reduction <add>, %38, %cst_23 [2] : vector<8x2x8xf32> to vector<8x2xf32>
    %40 = vector.shape_cast %39 : vector<8x2xf32> to vector<8x2x1xf32>
    %41 = tpu.reciprocal %40 {approx = true} : vector<8x2x1xf32> -> vector<8x2x1xf32>
    %42 = vector.broadcast %41 : vector<8x2x1xf32> to vector<8x2x8xf32>
    %43 = arith.mulf %38, %42 : vector<8x2x8xf32>
    "tpu.trace_start"() <{level = 10 : i32, message = "bhs,bsd->bhd"}> : () -> ()
    %cst_24 = arith.constant dense<0.000000e+00> : vector<8x2x20xf32>
    %44 = tpu.matmul %43, %11, %cst_24 {dimension_numbers = #tpu.dot_dimension_numbers<[2], [1], [1], [2], [0, 0, 0, 1, 1, 2], [0], [0]>} : vector<8x2x8xf32>, vector<8x8x20xf32>, vector<8x2x20xf32> -> vector<8x2x20xf32>
    "tpu.trace_stop"() : () -> ()
    %45 = vector.shape_cast %24 : vector<2x20xf32> to vector<1x2x20xf32>
    %46 = vector.broadcast %45 : vector<1x2x20xf32> to vector<8x2x20xf32>
    %47 = arith.mulf %44, %46 : vector<8x2x20xf32>
    %cst_25 = arith.constant dense<0.000000e+00> : vector<8x20xf32>
    %48 = vector.multi_reduction <add>, %47, %cst_25 [1] : vector<8x2x20xf32> to vector<8x20xf32>
    %c0_26 = arith.constant 0 : index
    %c0_27 = arith.constant 0 : index
    %49 = vector.load %arg8[%c0_26, %c0_27] : memref<20x10xf32, #tpu.memory_space<vmem>>, vector<20x10xf32>
    %cst_28 = arith.constant dense<0.000000e+00> : vector<8x10xf32>
    %50 = tpu.matmul %48, %49, %cst_28 {dimension_numbers = #tpu.dot_dimension_numbers<[1], [0], [0], [1], [0, 0, 1, 1], [], []>} : vector<8x20xf32>, vector<20x10xf32>, vector<8x10xf32> -> vector<8x10xf32>
    %51 = vector.extract_strided_slice %0 {offsets = [1, 0], sizes = [1, 10], strides = [1, 1]} : vector<9x10xf32> to vector<1x10xf32>
    %52 = vector.broadcast %51 : vector<1x10xf32> to vector<8x10xf32>
    %53 = arith.addf %50, %52 : vector<8x10xf32>
    %54 = arith.addf %17, %53 : vector<8x10xf32>
    %55 = vector.extract_strided_slice %0 {offsets = [2, 0], sizes = [1, 10], strides = [1, 1]} : vector<9x10xf32> to vector<1x10xf32>
    %56 = vector.extract_strided_slice %0 {offsets = [3, 0], sizes = [1, 10], strides = [1, 1]} : vector<9x10xf32> to vector<1x10xf32>
    %cst_29 = arith.constant dense<0.000000e+00> : vector<8xf32>
    %57 = vector.multi_reduction <add>, %54, %cst_29 [1] : vector<8x10xf32> to vector<8xf32>
    %58 = vector.shape_cast %57 : vector<8xf32> to vector<8x1xf32>
    %cst_30 = arith.constant 1.000000e+01 : f32
    %59 = vector.broadcast %cst_30 : f32 to vector<8x1xf32>
    %60 = arith.divf %58, %59 : vector<8x1xf32>
    %61 = vector.broadcast %60 : vector<8x1xf32> to vector<8x10xf32>
    %62 = arith.subf %54, %61 : vector<8x10xf32>
    %63 = arith.mulf %62, %62 : vector<8x10xf32>
    %cst_31 = arith.constant dense<0.000000e+00> : vector<8xf32>
    %64 = vector.multi_reduction <add>, %63, %cst_31 [1] : vector<8x10xf32> to vector<8xf32>
    %65 = vector.shape_cast %64 : vector<8xf32> to vector<8x1xf32>
    %cst_32 = arith.constant 1.000000e+01 : f32
    %66 = vector.broadcast %cst_32 : f32 to vector<8x1xf32>
    %67 = arith.divf %65, %66 : vector<8x1xf32>
    %68 = vector.broadcast %60 : vector<8x1xf32> to vector<8x10xf32>
    %69 = arith.subf %54, %68 : vector<8x10xf32>
    %cst_33 = arith.constant 9.99999974E-6 : f32
    %70 = vector.broadcast %cst_33 : f32 to vector<8x1xf32>
    %71 = arith.addf %67, %70 : vector<8x1xf32>
    %72 = math.rsqrt %71 : vector<8x1xf32>
    %73 = vector.broadcast %72 : vector<8x1xf32> to vector<8x10xf32>
    %74 = arith.mulf %69, %73 : vector<8x10xf32>
    %75 = vector.broadcast %55 : vector<1x10xf32> to vector<8x10xf32>
    %76 = arith.mulf %74, %75 : vector<8x10xf32>
    %77 = vector.broadcast %56 : vector<1x10xf32> to vector<8x10xf32>
    %78 = arith.addf %76, %77 : vector<8x10xf32>
    %c0_34 = arith.constant 0 : index
    %c0_35 = arith.constant 0 : index
    %79 = vector.load %arg9[%c0_34, %c0_35] : memref<10x2048xf32, #tpu.memory_space<vmem>>, vector<10x2048xf32>
    %cst_36 = arith.constant dense<0.000000e+00> : vector<8x2048xf32>
    %80 = tpu.matmul %78, %79, %cst_36 {dimension_numbers = #tpu.dot_dimension_numbers<[1], [0], [0], [1], [0, 0, 1, 1], [], []>} : vector<8x10xf32>, vector<10x2048xf32>, vector<8x2048xf32> -> vector<8x2048xf32>
    %c0_37 = arith.constant 0 : index
    %c0_38 = arith.constant 0 : index
    %81 = vector.load %arg10[%c0_37, %c0_38] : memref<1x2048xf32, #tpu.memory_space<vmem>>, vector<1x2048xf32>
    %82 = vector.broadcast %81 : vector<1x2048xf32> to vector<8x2048xf32>
    %83 = arith.addf %80, %82 : vector<8x2048xf32>
    %cst_39 = arith.constant 0.000000e+00 : f32
    %84 = vector.broadcast %cst_39 : f32 to vector<8x2048xf32>
    %85 = arith.maximumf %83, %84 : vector<8x2048xf32>
    %c0_40 = arith.constant 0 : index
    %c0_41 = arith.constant 0 : index
    %86 = vector.load %arg11[%c0_40, %c0_41] : memref<2048x10xf32, #tpu.memory_space<vmem>>, vector<2048x10xf32>
    %cst_42 = arith.constant dense<0.000000e+00> : vector<8x10xf32>
    %87 = tpu.matmul %85, %86, %cst_42 {dimension_numbers = #tpu.dot_dimension_numbers<[1], [0], [0], [1], [0, 0, 1, 1], [], []>} : vector<8x2048xf32>, vector<2048x10xf32>, vector<8x10xf32> -> vector<8x10xf32>
    %88 = vector.extract_strided_slice %0 {offsets = [6, 0], sizes = [1, 10], strides = [1, 1]} : vector<9x10xf32> to vector<1x10xf32>
    %89 = vector.broadcast %88 : vector<1x10xf32> to vector<8x10xf32>
    %90 = arith.addf %87, %89 : vector<8x10xf32>
    %91 = arith.addf %78, %90 : vector<8x10xf32>
    %92 = vector.extract_strided_slice %0 {offsets = [4, 0], sizes = [1, 10], strides = [1, 1]} : vector<9x10xf32> to vector<1x10xf32>
    %93 = vector.extract_strided_slice %0 {offsets = [5, 0], sizes = [1, 10], strides = [1, 1]} : vector<9x10xf32> to vector<1x10xf32>
    %cst_43 = arith.constant dense<0.000000e+00> : vector<8xf32>
    %94 = vector.multi_reduction <add>, %91, %cst_43 [1] : vector<8x10xf32> to vector<8xf32>
    %95 = vector.shape_cast %94 : vector<8xf32> to vector<8x1xf32>
    %cst_44 = arith.constant 1.000000e+01 : f32
    %96 = vector.broadcast %cst_44 : f32 to vector<8x1xf32>
    %97 = arith.divf %95, %96 : vector<8x1xf32>
    %98 = vector.broadcast %97 : vector<8x1xf32> to vector<8x10xf32>
    %99 = arith.subf %91, %98 : vector<8x10xf32>
    %100 = arith.mulf %99, %99 : vector<8x10xf32>
    %cst_45 = arith.constant dense<0.000000e+00> : vector<8xf32>
    %101 = vector.multi_reduction <add>, %100, %cst_45 [1] : vector<8x10xf32> to vector<8xf32>
    %102 = vector.shape_cast %101 : vector<8xf32> to vector<8x1xf32>
    %cst_46 = arith.constant 1.000000e+01 : f32
    %103 = vector.broadcast %cst_46 : f32 to vector<8x1xf32>
    %104 = arith.divf %102, %103 : vector<8x1xf32>
    %105 = vector.broadcast %97 : vector<8x1xf32> to vector<8x10xf32>
    %106 = arith.subf %91, %105 : vector<8x10xf32>
    %cst_47 = arith.constant 9.99999974E-6 : f32
    %107 = vector.broadcast %cst_47 : f32 to vector<8x1xf32>
    %108 = arith.addf %104, %107 : vector<8x1xf32>
    %109 = math.rsqrt %108 : vector<8x1xf32>
    %110 = vector.broadcast %109 : vector<8x1xf32> to vector<8x10xf32>
    %111 = arith.mulf %106, %110 : vector<8x10xf32>
    %112 = vector.broadcast %92 : vector<1x10xf32> to vector<8x10xf32>
    %113 = arith.mulf %111, %112 : vector<8x10xf32>
    %114 = vector.broadcast %93 : vector<1x10xf32> to vector<8x10xf32>
    %115 = arith.addf %113, %114 : vector<8x10xf32>
    %116 = vector.extract_strided_slice %0 {offsets = [7, 0], sizes = [1, 10], strides = [1, 1]} : vector<9x10xf32> to vector<1x10xf32>
    %117 = vector.broadcast %116 : vector<1x10xf32> to vector<8x10xf32>
    %118 = arith.mulf %115, %117 : vector<8x10xf32>
    %cst_48 = arith.constant dense<0.000000e+00> : vector<8xf32>
    %119 = vector.multi_reduction <add>, %118, %cst_48 [1] : vector<8x10xf32> to vector<8xf32>
    %120 = vector.shape_cast %119 : vector<8xf32> to vector<8x1xf32>
    %121 = vector.extract_strided_slice %0 {offsets = [8, 0], sizes = [1, 1], strides = [1, 1]} : vector<9x10xf32> to vector<1x1xf32>
    %122 = vector.broadcast %121 : vector<1x1xf32> to vector<8x1xf32>
    %123 = arith.addf %120, %122 : vector<8x1xf32>
    %c0_49 = arith.constant 0 : index
    %c0_50 = arith.constant 0 : index
    %124 = vector.load %arg14[%c0_49, %c0_50] : memref<8x1xf32, #tpu.memory_space<vmem>>, vector<8x1xf32>
    tpu.vector_store %arg14[%c0_49, %c0_50], %123 {strides = array<i32>} : memref<8x1xf32, #tpu.memory_space<vmem>>, vector<8x1xf32>,
    return
  }
  func.func @transform_0(%arg0: i32) -> (i32, i32, i32) {
    %c0_i32 = arith.constant 0 : i32
    %c0_i32_0 = arith.constant 0 : i32
    %c0_i32_1 = arith.constant 0 : i32
    return %arg0, %c0_i32, %c0_i32_0 : i32, i32, i32
  }
  func.func @transform_1(%arg0: i32) -> (i32, i32) {
    %c0_i32 = arith.constant 0 : i32
    %c0_i32_0 = arith.constant 0 : i32
    return %arg0, %c0_i32 : i32, i32
  }
  func.func @transform_2(%arg0: i32) -> (i32, i32, i32) {
    %c0_i32 = arith.constant 0 : i32
    %c0_i32_0 = arith.constant 0 : i32
    %c0_i32_1 = arith.constant 0 : i32
    return %arg0, %c0_i32, %c0_i32_0 : i32, i32, i32
  }
  func.func @transform_3(%arg0: i32) -> (i32, i32) {
    %c0_i32 = arith.constant 0 : i32
    %c0_i32_0 = arith.constant 0 : i32
    %c0_i32_1 = arith.constant 0 : i32
    return %c0_i32, %c0_i32_0 : i32, i32
  }
  func.func @transform_4(%arg0: i32) -> (i32, i32) {
    %c0_i32 = arith.constant 0 : i32
    %c0_i32_0 = arith.constant 0 : i32
    %c0_i32_1 = arith.constant 0 : i32
    return %c0_i32, %c0_i32_0 : i32, i32
  }
  func.func @transform_5(%arg0: i32) -> (i32, i32) {
    %c0_i32 = arith.constant 0 : i32
    %c0_i32_0 = arith.constant 0 : i32
    %c0_i32_1 = arith.constant 0 : i32
    return %c0_i32, %c0_i32_0 : i32, i32
  }
  func.func @transform_6(%arg0: i32) -> (i32, i32) {
    %c0_i32 = arith.constant 0 : i32
    %c0_i32_0 = arith.constant 0 : i32
    %c0_i32_1 = arith.constant 0 : i32
    return %c0_i32, %c0_i32_0 : i32, i32
  }
  func.func @transform_7(%arg0: i32) -> (i32, i32) {
    %c0_i32 = arith.constant 0 : i32
    %c0_i32_0 = arith.constant 0 : i32
    %c0_i32_1 = arith.constant 0 : i32
    return %c0_i32, %c0_i32_0 : i32, i32
  }
  func.func @transform_8(%arg0: i32) -> (i32, i32) {
    %c0_i32 = arith.constant 0 : i32
    %c0_i32_0 = arith.constant 0 : i32
    %c0_i32_1 = arith.constant 0 : i32
    return %c0_i32, %c0_i32_0 : i32, i32
  }
  func.func @transform_9(%arg0: i32) -> (i32, i32) {
    %c0_i32 = arith.constant 0 : i32
    %c0_i32_0 = arith.constant 0 : i32
    %c0_i32_1 = arith.constant 0 : i32
    return %c0_i32, %c0_i32_0 : i32, i32
  }
  func.func @transform_10(%arg0: i32) -> (i32, i32) {
    %c0_i32 = arith.constant 0 : i32
    %c0_i32_0 = arith.constant 0 : i32
    %c0_i32_1 = arith.constant 0 : i32
    return %c0_i32, %c0_i32_0 : i32, i32
  }
  func.func @transform_11(%arg0: i32) -> (i32, i32) {
    %c0_i32 = arith.constant 0 : i32
    %c0_i32_0 = arith.constant 0 : i32
    %c0_i32_1 = arith.constant 0 : i32
    return %c0_i32, %c0_i32_0 : i32, i32
  }
  func.func @transform_12(%arg0: i32) -> (i32, i32) {
    %c0_i32 = arith.constant 0 : i32
    %c0_i32_0 = arith.constant 0 : i32
    %c0_i32_1 = arith.constant 0 : i32
    return %c0_i32, %c0_i32_0 : i32, i32
  }
  func.func @transform_13(%arg0: i32) -> (i32, i32) {
    %c0_i32 = arith.constant 0 : i32
    %c0_i32_0 = arith.constant 0 : i32
    return %arg0, %c0_i32 : i32, i32
  }
}

</mosaic_0001>

<bundles_post_ra>
// kernel: tpu_custom_call.1
= control target key start
LH: loop header
LB: loop body
LE: loop exit
PB: predicated region body
PF: predicated region fallthrough
CT: control target
= control target key end

     0   :  { %s2816_s25 = smov 0   ;;  %s3949_s0 = inlined_call_operand.vmem [shape: f32[16,8,3], index: 0, kind: input, shape index: {}]   ;;  %s3950_s1 = inlined_call_operand.vmem [shape: f32[16,3], index: 1, kind: input, shape index: {}]   ;;  %s3951_s2 = inlined_call_operand.vmem [shape: f32[16,1,8], index: 2, kind: input, shape index: {}]   ;;  %s3952_s3 = inlined_call_operand.vmem [shape: f32[3,20], index: 3, kind: input, shape index: {}]   ;;  %s3953_s4 = inlined_call_operand.vmem [shape: f32[8,20], index: 4, kind: input, shape index: {}]   ;;  %s3954_s5 = inlined_call_operand.vmem [shape: f32[3,10], index: 5, kind: input, shape index: {}]   ;;  %s3955_s6 = inlined_call_operand.vmem [shape: f32[10,20], index: 6, kind: input, shape index: {}]   ;;  %s3956_s7 = inlined_call_operand.vmem [shape: f32[20,10], index: 7, kind: input, shape index: {}]   ;;  %s3957_s8 = inlined_call_operand.vmem [shape: f32[10,2048], index: 8, kind: input, shape index: {}]   ;;  %s3958_s9 = inlined_call_operand.vmem [shape: f32[1,2048], index: 9, kind: input, shape index: {}]   ;;  %s3959_s10 = inlined_call_operand.vmem [shape: f32[2048,10], index: 10, kind: input, shape index: {}]   ;;  %s3960_s11 = inlined_call_operand.vmem [shape: f32[5,20], index: 11, kind: input, shape index: {}]   ;;  %s3961_s12 = inlined_call_operand.vmem [shape: f32[9,10], index: 12, kind: input, shape index: {}]   ;;  %s3962_s13 = inlined_call_operand.vmem [shape: f32[16,1], index: 13, kind: output, shape index: {}]  }
   0x1 LB: > { %s2590_s26 = sadd.s32 4294967295, %s2743_s25   ;;  %p2594_p0 = scmp.ge.s32.totalorder %s2743_s25, 1  ;;  %s2743_s25 = sphi %s2816_s25, %s23_s25  }
   0x2   : > { %p407_p1 = scmp.lt.s32.totalorder %s2743_s25, 3 }
   0x4   : > { %p408_p2 = pnand %p2594_p0, %p407_p1 }
   0x5   : > { %s2595_s29 = sshll.u32 (!%p408_p2), %s2590_s26, 3  ;;  %p464_p4 = scmp.lt.s32.totalorder (!%p408_p2), %s2590_s26, 1 }
   0x6   : > { %411 = sbr.rel (%p408_p2) target bundleno = 1990 (0x7c6), region = 72  ;;  %p459_p3 = scmp.lt.s32.totalorder (!%p408_p2), %s2595_s29, 15 }
   0xb   : > { %v480_v0 = vld [vmem:[%s3952_s3] sm:$0x7]  ;;  %vm494_vm0 = vcmask 1042432   ;;  %s3964_s29 = smov (!%p459_p3, %s2595_s29), 15  ;;  %vm490_vm1 = vcmask 23552   ;;  %s3966_s26 = smov (!%p464_p4, %s2590_s26), 1 }
   0xc   : > { %2600 = vmatpush.msk.msra.mxu0 %vm494_vm0, %v480_v0  ;;  %2604 = vmatpush.msk.msra.mxu2 %vm494_vm0, %v480_v0  ;;  %s2596_s30 = sshll.u32 %s3964_s29, 3  ;;  %v680_v1 = vld [vmem:[%s3954_s5] sm:$0x7]  ;;  %s2597_s19 = sshll.u32 %s3966_s26, 3  ;;  %v709_v9 = vld [vmem:[%s3955_s6 + $0x8] sm:$0x3] }
   0xd   : > { %2602 = vmatpush.msk.msra.mxu1 %vm494_vm0, %v480_v0  ;;  %2606 = vmatpush.msk.msra.mxu3 %vm494_vm0, %v480_v0  ;;  %s462_s16 = scalar_lea.vmem %s3949_s0, %s2596_s30  ;;  %s467_s22 = scalar_lea.vmem %s3950_s1, %s2597_s19  ;;  %vm715_vm2 = vcmask 1041408   ;;  %v708_v11 = vld [vmem:[%s3955_s6] sm:$0xff]  ;;  %vm805_vm3 = vcmask 162816   ;;  %vm711_vm4 = vcmask 80896   ;;  %vm1020_vm5 = vcmask 58368  }
   0xe   : > { %2608 = vmatpush.msk.msrb.mxu0 %vm494_vm0, %v480_v0  ;;  %2612 = vmatpush.msk.msrb.mxu2 %vm494_vm0, %v480_v0  ;;  %v481_v2 = vld [vmem:[%s462_s16] sm:$0xff]  ;;  %v482_v5 = vld [vmem:[%s462_s16 + $0x8] sm:$0xff]  ;;  %v483_v6 = vld [vmem:[%s462_s16 + $0x10] sm:$0xff]  ;;  %s2891_s20 = scalar_lea.vmem %s3951_s2, %s3964_s29  ;;  %vm1109_vm6 = vcmask 64512   ;;  %vm1305_vm7 = vcmask 156672   ;;  %vm1390_vm8 = vcmask 1043456   ;;  %s476_s28 = scalar_lea.vmem %s3962_s13, %s2597_s19 }
   0xf   : > { %2610 = vmatpush.msk.msrb.mxu1 %vm494_vm0, %v480_v0  ;;  %2614 = vmatpush.msk.msrb.mxu3 %vm494_vm0, %v480_v0  ;;  %v485_v3 = vld [vmem:[%s462_s16 + $0x20] sm:$0xff]  ;;  %v486_v7 = vld [vmem:[%s462_s16 + $0x28] sm:$0xff]  ;;  %v487_v8 = vld [vmem:[%s462_s16 + $0x30] sm:$0xff]  ;;  %vm1374_vm9 = vcmask 1041409   ;;  %vm1376_vm10 = vcmask 1042434   ;;  %vm1378_vm11 = vcmask 1043459  }
  0x10   : > { %2601 = vmatmul.msk.f32.vlgmr.msra.gmra.mxu0 %vm490_vm1, %v481_v2  ;;  %v679_v4 = vld [vmem:[%s467_s22] sm:$0xff]  ;;  %2603 = vmatmul.msk.f32.vlgmr.msra.gmra.mxu1 %vm490_vm1, %v482_v5  ;;  %v484_v10 = vld [vmem:[%s462_s16 + $0x18] sm:$0xff]  ;;  %vm1380_vm12 = vcmask 1044484   ;;  %vm1382_vm13 = vcmask 1045509   ;;  %vm1384_vm14 = vcmask 1046534   ;;  %vm1386_vm15 = vcmask 1047559  }
  0x11   : > { %2616 = vmatpush.msk.msra.mxu0 %vm494_vm0, %v680_v1  ;;  %2605 = vmatmul.msk.f32.vlgmr.msra.gmra.mxu2 %vm490_vm1, %v483_v6  ;;  %v488_v12 = vld [vmem:[%s462_s16 + $0x38] sm:$0xff]  ;;  %v489_v13 = vld [vmem:[%s3953_s4] sm:$0xff] }
  0x12   : > { %2618 = vmatpush.msk.msra.mxu1 %vm715_vm2, %v709_v9  ;;  %2607 = vmatmul.msk.f32.vlgmr.msra.gmra.mxu3 %vm490_vm1, %v484_v10  ;;  %v2878_v18 = vld [vmem:[%s3961_s12] sm:$0xff] }
  0x13   : > { %v681_v19 = vperm.slane %v2878_v18, 0  ;;  %v2902_v34 = vld [vmem:[%s3960_s11] sm:$0x1f] }
  0x14   : > { %734 = vmatpush.msra.mxu1 %v708_v11  ;;  %v710_v35 = vperm.slane %v2902_v34, 0  ;;  %v2689_v5 = vld [vmem:[%s2891_s20 + $0x2] ss:$0 sm:$0xff]  ;;  %v2690_v6 = vld [vmem:[%s2891_s20 + $0x3] ss:$0 sm:$0xff] }
  0x15   : > { %v2691_v10 = vld [vmem:[%s2891_s20] ss:$0 sm:$0xff] }
  0x18   : > { %2609 = vmatmul.msk.f32.vlgmr.msrb.gmra.mxu0 %vm490_vm1, %v485_v3  ;;  %2611 = vmatmul.msk.f32.vlgmr.msrb.gmra.mxu1 %vm490_vm1, %v486_v7 }
  0x19   : > { %2613 = vmatmul.msk.f32.vlgmr.msrb.gmra.mxu2 %vm490_vm1, %v487_v8 }
  0x1a   : > { %2615 = vmatmul.msk.f32.vlgmr.msrb.gmra.mxu3 %vm490_vm1, %v488_v12 }
  0x20   : > { %2617 = vmatmul.msk.f32.vlgmr.msra.gmra.mxu0 %vm490_vm1, %v679_v4 }
  0x8d   : > { %v515_v14 = vpop.f32.mrf.mxu0  ;;  %v538_v22 = vpop.f32.mrf.mxu1 }
  0x8e   : > { %v516_v15 = vadd.f32 %v515_v14, %v489_v13  ;;  %v539_v23 = vadd.f32 %v538_v22, %v489_v13 }
  0x90   : > { %2620 = vmatpush.xpose.msk.msra.mxu2 %vm805_vm3, %v516_v15  ;;  %2622 = vmatpush.xpose.msk.msra.mxu3 %vm805_vm3, %v539_v23 }
  0x94   : > { %v561_v26 = vpop.f32.mrf.mxu2 }
  0x95   : > { %v607_v16 = vpop.f32.mrf.mxu0  ;;  %v630_v24 = vpop.f32.mrf.mxu1  ;;  %v562_v27 = vadd.f32 %v561_v26, %v489_v13 }
  0x96   : > { %v2873_v17 = vadd.f32 %v607_v16, %v489_v13  ;;  %v631_v25 = vadd.f32 %v630_v24, %v489_v13  ;;  %v584_v28 = vpop.f32.mrf.mxu3 }
  0x97   : > { %2624 = vmatpush.xpose.msk.msrb.mxu0 %vm805_vm3, %v562_v27  ;;  %v585_v29 = vadd.f32 %v584_v28, %v489_v13  ;;  %v2694_v28 = vld [vmem:[%s2891_s20 + $0x7] ss:$0 sm:$0xff] }
  0x98   : > { %2628 = vmatpush.xpose.msk.msrb.mxu2 %vm805_vm3, %v2873_v17  ;;  %2630 = vmatpush.xpose.msk.msrb.mxu3 %vm805_vm3, %v631_v25 }
  0x99   : > { %2626 = vmatpush.xpose.msk.msrb.mxu1 %vm805_vm3, %v585_v29 }
  0x9c   : > { %v653_v30 = vpop.f32.mrf.mxu2 }
  0x9d   : > { %v705_v20 = vpop.f32.mrf.mxu0  ;;  %v654_v31 = vadd.f32 %v653_v30, %v489_v13 }
  0x9e   : > { %v2883_v21 = vadd.f32 %v705_v20, %v681_v19  ;;  %v676_v32 = vpop.f32.mrf.mxu3  ;;  %v2695_v20 = vld [vmem:[%s2891_s20 + $0x4] ss:$0 sm:$0xff] }
  0x9f   : > { %v677_v33 = vadd.f32 %v676_v32, %v489_v13  ;;  %2632 = vmatpush.xpose.msk.msra.mxu0 %vm805_vm3, %v654_v31 }
  0xa0   : > { %2619 = vmatmul.msk.f32.vlgmr.msra.gmra.mxu1 %vm711_vm4, %v2883_v21 }
  0xa1   : > { %2634 = vmatpush.xpose.msk.msra.mxu1 %vm805_vm3, %v677_v33 }
 0x11d   : > { %v736_v36 = vpop.f32.mrf.mxu1 }
 0x11e   : > { %v737_v37 = vadd.f32 %v736_v36, %v710_v35 }
 0x120   : > { %v747_v38 = vperm.slane %v737_v37, 0  ;;  %v740_v39 = vrot.slane %v737_v37, 1  ;;  %v741_v40 = vrot.slane %v737_v37, 2  ;;  %v742_v41 = vrot.slane %v737_v37, 3 }
 0x121   : > { %v743_v42 = vrot.slane %v737_v37, 4  ;;  %v744_v43 = vrot.slane %v737_v37, 5  ;;  %v745_v44 = vrot.slane %v737_v37, 6  ;;  %v746_v50 = vrot.slane %v737_v37, 7 }
 0x122   : > { %v763_v45 = vmul.f32 %v747_v38, %v2902_v34  ;;  %v748_v46 = vperm.slane %v740_v39, 0  ;;  %v749_v47 = vperm.slane %v741_v40, 0  ;;  %v750_v48 = vperm.slane %v742_v41, 0 }
 0x123   : > { %v751_v49 = vperm.slane %v743_v42, 0  ;;  %v752_v55 = vperm.slane %v744_v43, 0  ;;  %v753_v59 = vperm.slane %v745_v44, 0  ;;  %v754_v60 = vperm.slane %v746_v50, 0 }
 0x124   : > { %v804_v51 = vrot.slane %v763_v45, 1  ;;  %v764_v52 = vmul.f32 %v748_v46, %v2902_v34  ;;  %v765_v53 = vmul.f32 %v749_v47, %v2902_v34  ;;  %v766_v54 = vmul.f32 %v750_v48, %v2902_v34 }
 0x125   : > { %v767_v61 = vmul.f32 %v751_v49, %v2902_v34  ;;  %v768_v62 = vmul.f32 %v752_v55, %v2902_v34  ;;  %v769_v63 = vmul.f32 %v753_v59, %v2902_v34  ;;  %v770_v0 = vmul.f32 %v754_v60, %v2902_v34 }
 0x126   : > { %2621 = vmatmul.msk.f32.vlgmr.msra.gmra.mxu2 %vm805_vm3, %v804_v51  ;;  %v832_v56 = vrot.slane %v764_v52, 1  ;;  %v859_v57 = vrot.slane %v765_v53, 1  ;;  %v886_v58 = vrot.slane %v766_v54, 1 }
 0x127   : > { %1128 = vmatpush.msra.mxu2 %v516_v15  ;;  %v913_v1 = vrot.slane %v767_v61, 1  ;;  %v940_v2 = vrot.slane %v768_v62, 1  ;;  %v967_v3 = vrot.slane %v769_v63, 1  ;;  %v994_v4 = vrot.slane %v770_v0, 1 }
 0x128   : > { %2623 = vmatmul.msk.f32.vlgmr.msra.gmra.mxu3 %vm805_vm3, %v832_v56  ;;  %2625 = vmatmul.msk.f32.vlgmr.msrb.gmra.mxu0 %vm805_vm3, %v859_v57 }
 0x129   : > { %2627 = vmatmul.msk.f32.vlgmr.msrb.gmra.mxu1 %vm805_vm3, %v886_v58  ;;  %1151 = vmatpush.msra.mxu3 %v539_v23  ;;  %v2696_v23 = vld [vmem:[%s2891_s20 + $0x5] ss:$0 sm:$0xff] }
 0x12a   : > { %1174 = vmatpush.msrb.mxu0 %v562_v27  ;;  %1197 = vmatpush.msrb.mxu1 %v585_v29  ;;  %v2693_v27 = vld [vmem:[%s2891_s20 + $0x6] ss:$0 sm:$0xff] }
 0x12e   : > { %2629 = vmatmul.msk.f32.vlgmr.msrb.gmra.mxu2 %vm805_vm3, %v913_v1 }
 0x12f   : > { %1220 = vmatpush.msrb.mxu2 %v2873_v17  ;;  %v2692_v17 = vld [vmem:[%s2891_s20 + $0x1] ss:$0 sm:$0xff] }
 0x130   : > { %2631 = vmatmul.msk.f32.vlgmr.msrb.gmra.mxu3 %vm805_vm3, %v940_v2  ;;  %2633 = vmatmul.msk.f32.vlgmr.msra.gmra.mxu0 %vm805_vm3, %v967_v3 }
 0x131   : > { %2635 = vmatmul.msk.f32.vlgmr.msra.gmra.mxu1 %vm805_vm3, %v994_v4  ;;  %1243 = vmatpush.msrb.mxu3 %v631_v25 }
 0x132   : > { %1266 = vmatpush.msra.mxu0 %v654_v31  ;;  %1289 = vmatpush.msra.mxu1 %v677_v33 }
 0x1a5   : > { %v882_v7 = vpop.f32.mrf.mxu0 }
 0x1a6   : > { %v883_v8 = vadd.f32 %v2689_v5, %v882_v7  ;;  %v909_v9 = vpop.f32.mrf.mxu1 }
 0x1a7   : > { %v910_v11 = vadd.f32 %v2690_v6, %v909_v9 }
 0x1a8   : > { %v1027_v12 = vsel %vm1020_vm5, %v883_v8, -inf }
 0x1a9   : > { %v1030_v13 = vsel %vm1020_vm5, %v910_v11, -inf  ;;  %1028 = vmax.xlane.f32.xlu1 %v1027_v12  ;;  %v828_v14 = vpop.f32.mrf.mxu2 }
 0x1aa   : > { %1031 = vmax.xlane.f32.xlu2 %v1030_v13  ;;  %v829_v15 = vadd.f32 %v2691_v10, %v828_v14 }
 0x1ab   : > { %v855_v16 = vpop.f32.mrf.mxu3 }
 0x1ac   : > { %v1021_v19 = vsel %vm1020_vm5, %v829_v15, -inf  ;;  %v856_v22 = vadd.f32 %v2692_v17, %v855_v16 }
 0x1ad   : > { %1022 = vmax.xlane.f32.xlu0 %v1021_v19  ;;  %v990_v32 = vpop.f32.mrf.mxu0 }
 0x1ae   : > { %v1024_v31 = vsel %vm1020_vm5, %v856_v22, -inf  ;;  %v1017_v33 = vpop.f32.mrf.mxu1  ;;  %v991_v36 = vadd.f32 %v2693_v27, %v990_v32 }
 0x1af   : > { %v1018_v37 = vadd.f32 %v2694_v28, %v1017_v33 }
 0x1b0   : > { %v1039_v39 = vsel %vm1020_vm5, %v991_v36, -inf }
 0x1b1   : > { %v936_v24 = vpop.f32.mrf.mxu2  ;;  %v1042_v38 = vsel %vm1020_vm5, %v1018_v37, -inf }
 0x1b2   : > { %v937_v25 = vadd.f32 %v2695_v20, %v936_v24 }
 0x1b3   : > { %v963_v26 = vpop.f32.mrf.mxu3 }
 0x1b4   : > { %v964_v29 = vadd.f32 %v2696_v23, %v963_v26  ;;  %v1033_v30 = vsel %vm1020_vm5, %v937_v25, -inf }
 0x1b5   : > { %1034 = vmax.xlane.f32.xlu1 %v1033_v30  ;;  %1025 = vmax.xlane.f32.xlu0 %v1024_v31 }
 0x1b6   : > { %v1036_v35 = vsel %vm1020_vm5, %v964_v29, -inf }
 0x1b7   : > { %1037 = vmax.xlane.f32.xlu2 %v1036_v35 }
 0x1bd   : > { %1043 = vmax.xlane.f32.xlu1 %v1042_v38  ;;  %1040 = vmax.xlane.f32.xlu0 %v1039_v39 }
 0x21c   : > { %v1029_v40 = vpop.xlane.xlu1 %1028 }
 0x21d   : > { %v1047_v41 = vsub.f32 %v883_v8, %v1029_v40  ;;  %v1032_v45 = vpop.xlane.xlu2 %1031 }
 0x21e   : > { %v1048_v58 = vsub.f32 %v910_v11, %v1032_v45 }
 0x21f   : > { %v1057_v42 = vmul.f32 1.442695, %v1047_v41 }
 0x220   : > { %v1023_v43 = vpop.xlane.xlu0 %1022  ;;  %v1059_v61 = vmul.f32 1.442695, %v1048_v58 }
 0x221   : > { %2698 = vpow2.f32 %v1057_v42  ;;  %v1045_v44 = vsub.f32 %v829_v15, %v1023_v43  ;;  %v1295_v43 = vrot.slane %v2902_v34, 3  ;;  %v1362_v34 = vld [vmem:[%s3956_s7] sm:$0xff] }
 0x223   : > { %v1053_v46 = vmul.f32 1.442695, %v1045_v44 }
 0x225   : > { %2700 = vpow2.f32 %v1053_v46  ;;  %v1364_v46 = vld [vmem:[%s3956_s7 + $0x10] sm:$0xf] }
 0x227   : > { %v2699_v47 = vpop.eup %2698 }
 0x228   : > { %v1035_v48 = vpop.xlane.xlu1 %1034  ;;  %v1026_v49 = vpop.xlane.xlu0 %1025  ;;  %v1075_v50 = vsel %vm1020_vm5, %v2699_v47, 0.0 }
 0x229   : > { %v1049_v51 = vsub.f32 %v937_v25, %v1035_v48  ;;  %v1046_v52 = vsub.f32 %v856_v22, %v1026_v49  ;;  %1076 = vadd.xlane.f32.xlu1 %v1075_v50  ;;  %v1363_v50 = vld [vmem:[%s3956_s7 + $0x8] sm:$0xff] }
 0x22a   : > { %v1038_v53 = vpop.xlane.xlu2 %1037 }
 0x22b   : > { %v2701_v54 = vpop.eup %2700  ;;  %v1061_v55 = vmul.f32 1.442695, %v1049_v51  ;;  %v1055_v56 = vmul.f32 1.442695, %v1046_v52  ;;  %v1050_v57 = vsub.f32 %v964_v29, %v1038_v53 }
 0x22c   : > { %v1069_v59 = vsel %vm1020_vm5, %v2701_v54, 0.0 }
 0x22d   : > { %2702 = vpow2.f32 %v1061_v55  ;;  %v1063_v60 = vmul.f32 1.442695, %v1050_v57  ;;  %1070 = vadd.xlane.f32.xlu2 %v1069_v59 }
 0x22e   : > { %2704 = vpow2.f32 %v1055_v56 }
 0x22f   : > { %2706 = vpow2.f32 %v1063_v60 }
 0x230   : > { %v1041_v62 = vpop.xlane.xlu0 %1040  ;;  %v1044_v63 = vpop.xlane.xlu1 %1043  ;;  %2708 = vpow2.f32 %v1059_v61 }
 0x231   : > { %v1051_v0 = vsub.f32 %v991_v36, %v1041_v62  ;;  %v1052_v4 = vsub.f32 %v1018_v37, %v1044_v63 }
 0x233   : > { %v2703_v1 = vpop.eup %2702  ;;  %v1065_v2 = vmul.f32 1.442695, %v1051_v0  ;;  %v1067_v9 = vmul.f32 1.442695, %v1052_v4 }
 0x234   : > { %v2705_v3 = vpop.eup %2704  ;;  %v1081_v5 = vsel %vm1020_vm5, %v2703_v1, 0.0 }
 0x235   : > { %v2707_v6 = vpop.eup %2706  ;;  %1082 = vadd.xlane.f32.xlu2 %v1081_v5  ;;  %v1072_v7 = vsel %vm1020_vm5, %v2705_v3, 0.0  ;;  %2710 = vpow2.f32 %v1065_v2 }
 0x236   : > { %1073 = vadd.xlane.f32.xlu0 %v1072_v7  ;;  %v1084_v8 = vsel %vm1020_vm5, %v2707_v6, 0.0  ;;  %v2709_v10 = vpop.eup %2708  ;;  %2712 = vpow2.f32 %v1067_v9 }
 0x237   : > { %1085 = vadd.xlane.f32.xlu1 %v1084_v8  ;;  %v1078_v12 = vsel %vm1020_vm5, %v2709_v10, 0.0 }
 0x23b   : > { %v2711_v11 = vpop.eup %2710 }
 0x23c   : > { %v1087_v13 = vsel %vm1020_vm5, %v2711_v11, 0.0  ;;  %v2713_v14 = vpop.eup %2712 }
 0x23d   : > { %1088 = vadd.xlane.f32.xlu2 %v1087_v13  ;;  %v1090_v15 = vsel %vm1020_vm5, %v2713_v14, 0.0 }
 0x23e   : > { %1079 = vadd.xlane.f32.xlu0 %v1078_v12 }
 0x246   : > { %1091 = vadd.xlane.f32.xlu0 %v1090_v15 }
 0x29c   : > { %v1077_v16 = vpop.xlane.xlu1 %1076 }
 0x29d   : > { %2714 = vrcp.f32 %v1077_v16 }
 0x2a0   : > { %v1071_v17 = vpop.xlane.xlu2 %1070 }
 0x2a1   : > { %2716 = vrcp.f32 %v1071_v17 }
 0x2a3   : > { %v2715_v19 = vpop.eup %2714 }
 0x2a4   : > { %v1103_v20 = vmul.f32 %v2715_v19, %v2699_v47 }
 0x2a6   : > { %2638 = vmatmul.msk.f32.vlgmr.msrb.gmra.mxu0 %vm1109_vm6, %v1103_v20 }
 0x2a7   : > { %v2717_v22 = vpop.eup %2716 }
 0x2a8   : > { %v1101_v23 = vmul.f32 %v2717_v22, %v2701_v54  ;;  %v1083_v24 = vpop.xlane.xlu2 %1082 }
 0x2a9   : > { %2718 = vrcp.f32 %v1083_v24  ;;  %v1074_v25 = vpop.xlane.xlu0 %1073 }
 0x2aa   : > { %2720 = vrcp.f32 %v1074_v25  ;;  %2636 = vmatmul.msk.f32.vlgmr.msra.gmra.mxu2 %vm1109_vm6, %v1101_v23  ;;  %v1086_v26 = vpop.xlane.xlu1 %1085 }
 0x2ab   : > { %2722 = vrcp.f32 %v1086_v26  ;;  %2644 = vmatpush.msk.msra.mxu2 %vm1390_vm8, %v1364_v46  ;;  %vm2514_vm8 = vcmask 7168  }
 0x2ad   : > { %1408 = vmatpush.msra.mxu2 %v1363_v50 }
 0x2af   : > { %v2719_v27 = vpop.eup %2718  ;;  %1409 = vmatpush.msra.mxu2 %v1362_v34 }
 0x2b0   : > { %v2721_v28 = vpop.eup %2720  ;;  %v1105_v29 = vmul.f32 %v2719_v27, %v2703_v1  ;;  %v1089_v31 = vpop.xlane.xlu2 %1088 }
 0x2b1   : > { %v1102_v30 = vmul.f32 %v2721_v28, %v2705_v3  ;;  %v1080_v32 = vpop.xlane.xlu0 %1079  ;;  %2724 = vrcp.f32 %v1089_v31  ;;  %v2723_v33 = vpop.eup %2722 }
 0x2b2   : > { %2640 = vmatmul.msk.f32.vlgmr.msrb.gmra.mxu2 %vm1109_vm6, %v1105_v29  ;;  %2726 = vrcp.f32 %v1080_v32  ;;  %v1106_v37 = vmul.f32 %v2723_v33, %v2707_v6 }
 0x2b3   : > { %2637 = vmatmul.msk.f32.vlgmr.msra.gmra.mxu3 %vm1109_vm6, %v1102_v30 }
 0x2b7   : > { %v2725_v35 = vpop.eup %2724 }
 0x2b8   : > { %v2727_v36 = vpop.eup %2726  ;;  %v1107_v38 = vmul.f32 %v2725_v35, %v2711_v11 }
 0x2b9   : > { %v1092_v39 = vpop.xlane.xlu0 %1091  ;;  %v1104_v40 = vmul.f32 %v2727_v36, %v2709_v10 }
 0x2ba   : > { %2728 = vrcp.f32 %v1092_v39  ;;  %2642 = vmatmul.msk.f32.vlgmr.msra.gmra.mxu0 %vm1109_vm6, %v1107_v38 }
 0x2bb   : > { %2641 = vmatmul.msk.f32.vlgmr.msrb.gmra.mxu3 %vm1109_vm6, %v1106_v37  ;;  %2639 = vmatmul.msk.f32.vlgmr.msrb.gmra.mxu1 %vm1109_vm6, %v1104_v40 }
 0x2c0   : > { %v2729_v41 = vpop.eup %2728 }
 0x2c1   : > { %v1108_v42 = vmul.f32 %v2729_v41, %v2713_v14 }
 0x2c3   : > { %2643 = vmatmul.msk.f32.vlgmr.msra.gmra.mxu1 %vm1109_vm6, %v1108_v42 }
 0x323   : > { %v1176_v44 = vpop.f32.mrf.mxu0 }
 0x324   : > { %v1299_v45 = vmul.f32 %v1295_v43, %v1176_v44 }
 0x326   : > { %v1320_v48 = vsel %vm1305_vm7, %v1299_v45, 0.0 }
 0x327   : > { %v1321_v52 = vrot.slane %v1320_v48, 4 }
 0x329   : > { %v1322_v55 = vadd.f32 %v1321_v52, %v1320_v48 }
 0x32b   : > { %v1323_v63 = vrot.slane %v1322_v55, 2 }
 0x32d   : > { %v1130_v47 = vpop.f32.mrf.mxu2  ;;  %v1324_v12 = vadd.f32 %v1323_v63, %v1322_v55  ;;  %v1365_v63 = vperm.slane %v2878_v18, 1 }
 0x32e   : > { %v1297_v49 = vmul.f32 %v1295_v43, %v1130_v47 }
 0x32f   : > { %v1325_v24 = vrot.slane %v1324_v12, 1 }
 0x330   : > { %v1306_v51 = vsel %vm1305_vm7, %v1297_v49, 0.0 }
 0x331   : > { %v1307_v53 = vrot.slane %v1306_v51, 4  ;;  %v1326_v39 = vadd.f32 %v1325_v24, %v1324_v12  ;;  %v1451_v24 = vld [vmem:[%s3957_s8 + $0x18] sm:$0xff] }
 0x333   : > { %v1308_v54 = vadd.f32 %v1307_v53, %v1306_v51 }
 0x335   : > { %v1222_v56 = vpop.f32.mrf.mxu2  ;;  %v1309_v60 = vrot.slane %v1308_v54, 2 }
 0x336   : > { %v1153_v57 = vpop.f32.mrf.mxu3  ;;  %v1301_v58 = vmul.f32 %v1295_v43, %v1222_v56 }
 0x337   : > { %v1298_v59 = vmul.f32 %v1295_v43, %v1153_v57  ;;  %v1268_v62 = vpop.f32.mrf.mxu0  ;;  %v1310_v8 = vadd.f32 %v1309_v60, %v1308_v54 }
 0x338   : > { %v1334_v61 = vsel %vm1305_vm7, %v1301_v58, 0.0  ;;  %v1199_v2 = vpop.f32.mrf.mxu1  ;;  %v1303_v3 = vmul.f32 %v1295_v43, %v1268_v62 }
 0x339   : > { %v1313_v0 = vsel %vm1305_vm7, %v1298_v59, 0.0  ;;  %v1335_v1 = vrot.slane %v1334_v61, 4  ;;  %v1300_v5 = vmul.f32 %v1295_v43, %v1199_v2  ;;  %v1311_v22 = vrot.slane %v1310_v8, 1 }
 0x33a   : > { %v1314_v4 = vrot.slane %v1313_v0, 4  ;;  %v1348_v7 = vsel %vm1305_vm7, %v1303_v3, 0.0 }
 0x33b   : > { %v1336_v6 = vadd.f32 %v1335_v1, %v1334_v61  ;;  %v1327_v10 = vsel %vm1305_vm7, %v1300_v5, 0.0  ;;  %v1349_v11 = vrot.slane %v1348_v7, 4  ;;  %v1312_v35 = vadd.f32 %v1311_v22, %v1310_v8  ;;  %v1449_v22 = vld [vmem:[%s3957_s8 + $0x8] sm:$0xff] }
 0x33c   : > { %v1315_v9 = vadd.f32 %v1314_v4, %v1313_v0  ;;  %v1328_v13 = vrot.slane %v1327_v10, 4  ;;  %v2745_v4 = vmov 10.0  }
 0x33d   : > { %v1350_v15 = vadd.f32 %v1349_v11, %v1348_v7  ;;  %v1337_v17 = vrot.slane %v1336_v6, 2  ;;  %2730 = vrcp.f32 %v2745_v4  ;;  %v1949_v4 = vld [vmem:[%s3959_s10 + $0x170] sm:$0xff] }
 0x33e   : > { %v1316_v14 = vrot.slane %v1315_v9, 2  ;;  %v1245_v16 = vpop.f32.mrf.mxu3  ;;  %v1329_v19 = vadd.f32 %v1328_v13, %v1327_v10 }
 0x33f   : > { %v1302_v20 = vmul.f32 %v1295_v43, %v1245_v16  ;;  %v1351_v26 = vrot.slane %v1350_v15, 2  ;;  %v1338_v32 = vadd.f32 %v1337_v17, %v1336_v6  ;;  %v1465_v16 = vld [vmem:[%s3957_s8 + $0x88] sm:$0x3]  ;;  %v1466_v17 = vld [vmem:[%s3957_s8 + $0x90] sm:$0x3] }
 0x340   : > { %v1317_v23 = vadd.f32 %v1316_v14, %v1315_v9  ;;  %v1330_v25 = vrot.slane %v1329_v19, 2  ;;  %v1291_v28 = vpop.f32.mrf.mxu1  ;;  %2648 = vmatpush.msk.msrb.mxu0 %vm715_vm2, %v1465_v16  ;;  %2650 = vmatpush.msk.msrb.mxu1 %vm715_vm2, %v1466_v17  ;;  %v1946_v16 = vld [vmem:[%s3959_s10 + $0x158] sm:$0xff] }
 0x341   : > { %v1341_v27 = vsel %vm1305_vm7, %v1302_v20, 0.0  ;;  %v1304_v31 = vmul.f32 %v1295_v43, %v1291_v28  ;;  %v1352_v41 = vadd.f32 %v1351_v26, %v1350_v15  ;;  %v1339_v46 = vrot.slane %v1338_v32, 1  ;;  %v1464_v15 = vld [vmem:[%s3957_s8 + $0x80] sm:$0x3]  ;;  %v1469_v26 = vld [vmem:[%s3957_s8 + $0xa8] sm:$0x3] }
 0x342   : > { %v1318_v29 = vrot.slane %v1317_v23, 1  ;;  %v1342_v30 = vrot.slane %v1341_v27, 4  ;;  %v1331_v33 = vadd.f32 %v1330_v25, %v1329_v19  ;;  %2646 = vmatpush.msk.msra.mxu3 %vm715_vm2, %v1464_v15  ;;  %v1467_v19 = vld [vmem:[%s3957_s8 + $0x98] sm:$0x3]  ;;  %v1448_v20 = vld [vmem:[%s3957_s8] sm:$0xff]  ;;  %1602 = vmatpush.msrb.mxu0 %v1449_v22  ;;  %v1945_v22 = vld [vmem:[%s3959_s10 + $0x150] sm:$0xff] }
 0x343   : > { %v1355_v38 = vsel %vm1305_vm7, %v1304_v31, 0.0  ;;  %v1353_v50 = vrot.slane %v1352_v41, 1  ;;  %v1340_v53 = vadd.f32 %v1339_v46, %v1338_v32  ;;  %v2731_v5 = vpop.eup %2730  ;;  %2652 = vmatpush.msk.msrb.mxu2 %vm715_vm2, %v1467_v19  ;;  %v1468_v25 = vld [vmem:[%s3957_s8 + $0xa0] sm:$0x3]  ;;  %v1471_v28 = vld [vmem:[%s3957_s8 + $0xb8] sm:$0x3] }
 0x344   : > { %v1319_v36 = vadd.f32 %v1318_v29, %v1317_v23  ;;  %v1343_v37 = vadd.f32 %v1342_v30, %v1341_v27  ;;  %v1332_v40 = vrot.slane %v1331_v33, 1  ;;  %v1356_v42 = vrot.slane %v1355_v38, 4  ;;  %v1450_v23 = vld [vmem:[%s3957_s8 + $0x10] sm:$0xff]  ;;  %1582 = vmatpush.msra.mxu3 %v1448_v20  ;;  %2656 = vmatpush.msk.msra.mxu0 %vm715_vm2, %v1469_v26  ;;  %v1452_v29 = vld [vmem:[%s3957_s8 + $0x20] sm:$0xff]  ;;  %v1453_v30 = vld [vmem:[%s3957_s8 + $0x28] sm:$0xff] }
 0x345   : > { %v1354_v56 = vadd.f32 %v1353_v50, %v1352_v41  ;;  %v1419_v6 = vmul.f32 10.0, %v2731_v5  ;;  %vm1423_vm0 = vweird.f32 %v2731_v5  ;;  %1622 = vmatpush.msrb.mxu1 %v1450_v23  ;;  %1642 = vmatpush.msrb.mxu2 %v1451_v24  ;;  %v1470_v27 = vld [vmem:[%s3957_s8 + $0xb0] sm:$0x3]  ;;  %v1446_v46 = vperm.slane %v2878_v18, 3  ;;  %v1473_v50 = vld [vmem:[%s3957_s8 + $0xc8] sm:$0x3] }
 0x346   : > { %v1375_v44 = vsel %vm1374_vm9, %v1319_v36, %v1312_v35  ;;  %v1344_v45 = vrot.slane %v1343_v37, 2  ;;  %v1333_v47 = vadd.f32 %v1332_v40, %v1331_v33  ;;  %v1357_v43 = vadd.f32 %v1356_v42, %v1355_v38  ;;  %2654 = vmatpush.msk.msrb.mxu3 %vm715_vm2, %v1468_v25  ;;  %v1454_v32 = vld [vmem:[%s3957_s8 + $0x30] sm:$0xff]  ;;  %v1455_v33 = vld [vmem:[%s3957_s8 + $0x38] sm:$0xff]  ;;  %1682 = vmatpush.msra.mxu0 %v1453_v30  ;;  %v1928_v25 = vld [vmem:[%s3959_s10 + $0xc8] sm:$0xff] }
 0x347   : > { %v1377_v48 = vsel %vm1376_vm10, %v1326_v39, %v1375_v44  ;;  %v1420_v7 = vsub.f32 1.0, %v1419_v6  ;;  %2658 = vmatpush.msk.msra.mxu1 %vm715_vm2, %v1470_v27  ;;  %v1444_v44 = vperm.slane %v2878_v18, 2  ;;  %v1474_v18 = vld [vmem:[%s3957_s8 + $0xd0] sm:$0x3]  ;;  %v1930_v15 = vld [vmem:[%s3959_s10 + $0xd8] sm:$0xff]  ;;  %v1944_v26 = vld [vmem:[%s3959_s10 + $0x148] sm:$0xff] }
 0x348   : > { %v1345_v49 = vadd.f32 %v1344_v45, %v1343_v37  ;;  %v1358_v34 = vrot.slane %v1357_v43, 2  ;;  %v1379_v51 = vsel %vm1378_vm11, %v1333_v47, %v1377_v48  ;;  %1662 = vmatpush.msrb.mxu3 %v1452_v29  ;;  %v1965_v6 = vld [vmem:[%s3959_s10 + $0x1f0] sm:$0xff]  ;;  %v1914_v17 = vld [vmem:[%s3959_s10 + $0x58] sm:$0xff]  ;;  %v1912_v27 = vld [vmem:[%s3959_s10 + $0x48] sm:$0xff] }
 0x349   : > { %v1381_v58 = vsel %vm1380_vm12, %v1340_v53, %v1379_v51  ;;  %v1421_v8 = vmul.f32 %v2731_v5, %v1420_v7  ;;  %1702 = vmatpush.msra.mxu1 %v1454_v32  ;;  %v1456_v51 = vld [vmem:[%s3957_s8 + $0x40] sm:$0xff]  ;;  %v1458_v53 = vld [vmem:[%s3957_s8 + $0x50] sm:$0xff]  ;;  %v1932_v7 = vld [vmem:[%s3959_s10 + $0xe8] sm:$0xff] }
 0x34a   : > { %v1346_v52 = vrot.slane %v1345_v49, 1  ;;  %v1359_v54 = vadd.f32 %v1358_v34, %v1357_v43  ;;  %v1475_v34 = vld [vmem:[%s3957_s8 + $0xd8] sm:$0x3]  ;;  %v1929_v20 = vld [vmem:[%s3959_s10 + $0xd0] sm:$0xff]  ;;  %v1927_v29 = vld [vmem:[%s3959_s10 + $0xc0] sm:$0xff] }
 0x34b   : > { %v1422_v9 = vadd.f32 %v2731_v5, %v1421_v8  ;;  %v1948_v8 = vld [vmem:[%s3959_s10 + $0x168] sm:$0xff]  ;;  %v1962_v19 = vld [vmem:[%s3959_s10 + $0x1d8] sm:$0xff]  ;;  %v1913_v23 = vld [vmem:[%s3959_s10 + $0x50] sm:$0xff] }
 0x34c   : > { %v1347_v55 = vadd.f32 %v1346_v52, %v1345_v49  ;;  %v1360_v57 = vrot.slane %v1359_v54, 1  ;;  %v1472_v49 = vld [vmem:[%s3957_s8 + $0xc0] sm:$0x3]  ;;  %v1457_v52 = vld [vmem:[%s3957_s8 + $0x48] sm:$0xff]  ;;  %v1961_v24 = vld [vmem:[%s3959_s10 + $0x1d0] sm:$0xff] }
 0x34d   : > { %v2976_v10 = vsel %vm1423_vm0, %v2731_v5, %v1422_v9  ;;  %v1917_v5 = vld [vmem:[%s3959_s10 + $0x70] sm:$0xff]  ;;  %v1916_v9 = vld [vmem:[%s3959_s10 + $0x68] sm:$0xff]  ;;  %v1943_v30 = vld [vmem:[%s3959_s10 + $0x140] sm:$0xff] }
 0x34e   : > { %v1383_v59 = vsel %vm1382_vm13, %v1347_v55, %v1381_v58  ;;  %v1361_v60 = vadd.f32 %v1360_v57, %v1359_v54  ;;  %v1459_v54 = vld [vmem:[%s3957_s8 + $0x58] sm:$0xff]  ;;  %v1476_v55 = vld [vmem:[%s3957_s8 + $0xe0] sm:$0x3]  ;;  %v1478_v57 = vld [vmem:[%s3957_s8 + $0xf0] sm:$0x3] }
 0x34f   : > { %v1385_v61 = vsel %vm1384_vm14, %v1354_v56, %v1383_v59  ;;  %v1477_v56 = vld [vmem:[%s3957_s8 + $0xe8] sm:$0x3]  ;;  %v1479_v58 = vld [vmem:[%s3957_s8 + $0xf8] sm:$0x3]  ;;  %v1460_v59 = vld [vmem:[%s3957_s8 + $0x60] sm:$0xff] }
 0x350   : > { %v1387_v62 = vsel %vm1386_vm15, %v1361_v60, %v1385_v61  ;;  %v1461_v60 = vld [vmem:[%s3957_s8 + $0x68] sm:$0xff]  ;;  %v1462_v61 = vld [vmem:[%s3957_s8 + $0x70] sm:$0xff]  ;;  %v1959_v32 = vld [vmem:[%s3959_s10 + $0x1c0] sm:$0xff] }
 0x351   : > { %2645 = vmatmul.msk.f32.vlgmr.msra.gmra.mxu2 %vm805_vm3, %v1387_v62  ;;  %v1463_v62 = vld [vmem:[%s3957_s8 + $0x78] sm:$0xff] }
 0x352   : > { %2660 = vmatpush.msk.msra.mxu2 %vm715_vm2, %v1471_v28  ;;  %v1960_v28 = vld [vmem:[%s3959_s10 + $0x1c8] sm:$0xff] }
 0x354   : > { %1722 = vmatpush.msra.mxu2 %v1455_v33  ;;  %v1926_v33 = vld [vmem:[%s3959_s10 + $0xb8] sm:$0xff] }
 0x3d4   : > { %v1411_v0 = vpop.f32.mrf.mxu2 }
 0x3d5   : > { %v1412_v1 = vadd.f32 %v1411_v0, %v1365_v63  ;;  %v1934_v63 = vld [vmem:[%s3959_s10 + $0xf8] sm:$0xff] }
 0x3d6   : > { %v1950_v0 = vld [vmem:[%s3959_s10 + $0x178] sm:$0xff] }
 0x3d7   : > { %v1414_v2 = vadd.f32 %v1412_v1, %v2883_v21  ;;  %v1918_v1 = vld [vmem:[%s3959_s10 + $0x78] sm:$0xff] }
 0x3d9   : > { %v1415_v3 = vsel %vm711_vm4, %v1414_v2, 0.0 }
 0x3da   : > { %1416 = vadd.xlane.f32.xlu1 %v1415_v3  ;;  %v1933_v3 = vld [vmem:[%s3959_s10 + $0xf0] sm:$0xff] }
 0x44d   : > { %v1417_v11 = vpop.xlane.xlu1 %1416 }
 0x44e   : > { %v1425_v12 = vmul.f32 %v2976_v10, %v1417_v11  ;;  %v1964_v11 = vld [vmem:[%s3959_s10 + $0x1e8] sm:$0xff] }
 0x450   : > { %v1426_v13 = vsub.f32 %v1414_v2, %v1425_v12  ;;  %v1966_v2 = vld [vmem:[%s3959_s10 + $0x1f8] sm:$0xff]  ;;  %v1931_v12 = vld [vmem:[%s3959_s10 + $0xe0] sm:$0xff] }
 0x452   : > { %v1427_v14 = vmul.f32 %v1426_v13, %v1426_v13 }
 0x454   : > { %v1428_v21 = vsel %vm711_vm4, %v1427_v14, 0.0  ;;  %v1915_v14 = vld [vmem:[%s3959_s10 + $0x60] sm:$0xff] }
 0x455   : > { %1429 = vadd.xlane.f32.xlu2 %v1428_v21  ;;  %v1963_v21 = vld [vmem:[%s3959_s10 + $0x1e0] sm:$0xff] }
 0x4c8   : > { %v1430_v31 = vpop.xlane.xlu2 %1429 }
 0x4c9   : > { %v1431_v35 = vmul.f32 %v1430_v31, %v2976_v10  ;;  %v1911_v31 = vld [vmem:[%s3959_s10 + $0x40] sm:$0xff] }
 0x4cb   : > { %v1432_v36 = vadd.f32 1e-05, %v1431_v35  ;;  %v1942_v35 = vld [vmem:[%s3959_s10 + $0x138] sm:$0xff] }
 0x4cd   : > { %2732 = vrsqrt.f32 %v1432_v36  ;;  %vm1439_vm3 = vweird.f32 %v1432_v36 }
 0x4d3   : > { %v2733_v37 = vpop.eup %2732 }
 0x4d4   : > { %v1434_v38 = vmul.f32 %v2733_v37, %v1432_v36  ;;  %vm1440_vm1 = vweird.f32 %v2733_v37  ;;  %v1910_v36 = vld [vmem:[%s3959_s10 + $0x38] sm:$0xff] }
 0x4d5   : > { %vm1441_vm5 = vmor %vm1439_vm3, %vm1440_vm1 }
 0x4d6   : > { %v1435_v39 = vmul.f32 %v2733_v37, %v1434_v38  ;;  %v1925_v38 = vld [vmem:[%s3959_s10 + $0xb0] sm:$0xff] }
 0x4d8   : > { %v1436_v40 = vmul.f32 0.5, %v1435_v39  ;;  %v1941_v39 = vld [vmem:[%s3959_s10 + $0x130] sm:$0xff] }
 0x4da   : > { %v1437_v41 = vsub.f32 1.5, %v1436_v40  ;;  %v1909_v40 = vld [vmem:[%s3959_s10 + $0x30] sm:$0xff] }
 0x4dc   : > { %v1438_v42 = vmul.f32 %v2733_v37, %v1437_v41  ;;  %v1957_v41 = vld [vmem:[%s3959_s10 + $0x1b0] sm:$0xff] }
 0x4de   : > { %v1442_v45 = vsel %vm1441_vm5, %v2733_v37, %v1438_v42  ;;  %v1958_v37 = vld [vmem:[%s3959_s10 + $0x1b8] sm:$0xff]  ;;  %v1924_v42 = vld [vmem:[%s3959_s10 + $0xa8] sm:$0xff] }
 0x4df   : > { %v1443_v47 = vmul.f32 %v1442_v45, %v1426_v13  ;;  %v1947_v13 = vld [vmem:[%s3959_s10 + $0x160] sm:$0xff]  ;;  %v1908_v45 = vld [vmem:[%s3959_s10 + $0x28] sm:$0xff] }
 0x4e1   : > { %v1445_v48 = vmul.f32 %v1444_v44, %v1443_v47  ;;  %v1940_v44 = vld [vmem:[%s3959_s10 + $0x128] sm:$0xff]  ;;  %v1923_v47 = vld [vmem:[%s3959_s10 + $0xa0] sm:$0xff] }
 0x4e3   : > { %v3039_v43 = vadd.f32 %v1446_v46, %v1445_v48  ;;  %v1956_v46 = vld [vmem:[%s3959_s10 + $0x1a8] sm:$0xff]  ;;  %v1939_v48 = vld [vmem:[%s3959_s10 + $0x120] sm:$0xff] }
 0x4e5   : > { %2647 = vmatmul.msk.f32.vlgmr.msra.gmra.mxu3 %vm711_vm4, %v3039_v43  ;;  %2649 = vmatmul.msk.f32.vlgmr.msrb.gmra.mxu0 %vm711_vm4, %v3039_v43 }
 0x4e6   : > { %2651 = vmatmul.msk.f32.vlgmr.msrb.gmra.mxu1 %vm711_vm4, %v3039_v43  ;;  %2653 = vmatmul.msk.f32.vlgmr.msrb.gmra.mxu2 %vm711_vm4, %v3039_v43 }
 0x4e7   : > { %2662 = vmatpush.msk.msra.mxu3 %vm715_vm2, %v1472_v49  ;;  %2664 = vmatpush.msk.msrb.mxu0 %vm715_vm2, %v1473_v50  ;;  %v1907_v49 = vld [vmem:[%s3959_s10 + $0x20] sm:$0xff] }
 0x4e8   : > { %2666 = vmatpush.msk.msrb.mxu1 %vm715_vm2, %v1474_v18  ;;  %2668 = vmatpush.msk.msrb.mxu2 %vm715_vm2, %v1475_v34  ;;  %v1955_v50 = vld [vmem:[%s3959_s10 + $0x1a0] sm:$0xff]  ;;  %v1922_v18 = vld [vmem:[%s3959_s10 + $0x98] sm:$0xff] }
 0x4e9   : > { %1742 = vmatpush.msra.mxu3 %v1456_v51  ;;  %1762 = vmatpush.msrb.mxu0 %v1457_v52  ;;  %v1938_v34 = vld [vmem:[%s3959_s10 + $0x118] sm:$0xff] }
 0x4ea   : > { %1782 = vmatpush.msrb.mxu1 %v1458_v53  ;;  %1802 = vmatpush.msrb.mxu2 %v1459_v54  ;;  %v1906_v51 = vld [vmem:[%s3959_s10 + $0x18] sm:$0xff]  ;;  %v1921_v53 = vld [vmem:[%s3959_s10 + $0x90] sm:$0xff] }
 0x4eb   : > { %v1954_v52 = vld [vmem:[%s3959_s10 + $0x198] sm:$0xff]  ;;  %v1937_v54 = vld [vmem:[%s3959_s10 + $0x110] sm:$0xff] }
 0x4ed   : > { %2655 = vmatmul.msk.f32.vlgmr.msrb.gmra.mxu3 %vm711_vm4, %v3039_v43  ;;  %2657 = vmatmul.msk.f32.vlgmr.msra.gmra.mxu0 %vm711_vm4, %v3039_v43 }
 0x4ee   : > { %2659 = vmatmul.msk.f32.vlgmr.msra.gmra.mxu1 %vm711_vm4, %v3039_v43  ;;  %2661 = vmatmul.msk.f32.vlgmr.msra.gmra.mxu2 %vm711_vm4, %v3039_v43 }
 0x4ef   : > { %2670 = vmatpush.msk.msrb.mxu3 %vm715_vm2, %v1476_v55  ;;  %2672 = vmatpush.msk.msra.mxu0 %vm715_vm2, %v1477_v56  ;;  %v1905_v55 = vld [vmem:[%s3959_s10 + $0x10] sm:$0xff] }
 0x4f0   : > { %2674 = vmatpush.msk.msra.mxu1 %vm715_vm2, %v1478_v57  ;;  %2676 = vmatpush.msk.msra.mxu2 %vm715_vm2, %v1479_v58  ;;  %v1953_v56 = vld [vmem:[%s3959_s10 + $0x190] sm:$0xff]  ;;  %v1920_v57 = vld [vmem:[%s3959_s10 + $0x88] sm:$0xff] }
 0x4f1   : > { %1822 = vmatpush.msrb.mxu3 %v1460_v59  ;;  %1842 = vmatpush.msra.mxu0 %v1461_v60  ;;  %v1936_v58 = vld [vmem:[%s3959_s10 + $0x108] sm:$0xff] }
 0x4f2   : > { %1862 = vmatpush.msra.mxu1 %v1462_v61  ;;  %1882 = vmatpush.msra.mxu2 %v1463_v62  ;;  %v1904_v59 = vld [vmem:[%s3959_s10 + $0x8] sm:$0xff]  ;;  %v1919_v61 = vld [vmem:[%s3959_s10 + $0x80] sm:$0xff] }
 0x4f3   : > { %v1952_v60 = vld [vmem:[%s3959_s10 + $0x188] sm:$0xff]  ;;  %v1935_v62 = vld [vmem:[%s3959_s10 + $0x100] sm:$0xff] }
 0x4f5   : > { %2663 = vmatmul.msk.f32.vlgmr.msra.gmra.mxu3 %vm711_vm4, %v3039_v43  ;;  %2665 = vmatmul.msk.f32.vlgmr.msrb.gmra.mxu0 %vm711_vm4, %v3039_v43 }
 0x4f6   : > { %2667 = vmatmul.msk.f32.vlgmr.msrb.gmra.mxu1 %vm711_vm4, %v3039_v43  ;;  %2669 = vmatmul.msk.f32.vlgmr.msrb.gmra.mxu2 %vm711_vm4, %v3039_v43 }
 0x4f7   : > { %2180 = vmatpush.msrb.mxu0 %v1934_v63  ;;  %2200 = vmatpush.msrb.mxu1 %v1950_v0  ;;  %v1998_v63 = vld [vmem:[%s3959_s10 + $0x2f8] sm:$0xff] }
 0x4f8   : > { %2160 = vmatpush.msra.mxu3 %v1918_v1  ;;  %2220 = vmatpush.msrb.mxu2 %v1966_v2  ;;  %v2014_v0 = vld [vmem:[%s3959_s10 + $0x378] sm:$0xff]  ;;  %v1903_v1 = vld [vmem:[%s3959_s10] sm:$0xff] }
 0x4f9   : > { %2181 = vmatpush.msrb.mxu0 %v1933_v3  ;;  %2201 = vmatpush.msrb.mxu1 %v1949_v4  ;;  %v1951_v2 = vld [vmem:[%s3959_s10 + $0x180] sm:$0xff]  ;;  %v1997_v3 = vld [vmem:[%s3959_s10 + $0x2f0] sm:$0xff] }
 0x4fa   : > { %2161 = vmatpush.msra.mxu3 %v1917_v5  ;;  %2221 = vmatpush.msrb.mxu2 %v1965_v6  ;;  %v2013_v4 = vld [vmem:[%s3959_s10 + $0x370] sm:$0xff]  ;;  %v1982_v5 = vld [vmem:[%s3959_s10 + $0x278] sm:$0xff] }
 0x4fb   : > { %2182 = vmatpush.msrb.mxu0 %v1932_v7  ;;  %2202 = vmatpush.msrb.mxu1 %v1948_v8  ;;  %v2030_v6 = vld [vmem:[%s3959_s10 + $0x3f8] sm:$0xff]  ;;  %v1996_v7 = vld [vmem:[%s3959_s10 + $0x2e8] sm:$0xff] }
 0x4fc   : > { %2162 = vmatpush.msra.mxu3 %v1916_v9  ;;  %2222 = vmatpush.msrb.mxu2 %v1964_v11  ;;  %v2012_v8 = vld [vmem:[%s3959_s10 + $0x368] sm:$0xff]  ;;  %v1981_v9 = vld [vmem:[%s3959_s10 + $0x270] sm:$0xff] }
 0x4fd   : > { %2671 = vmatmul.msk.f32.vlgmr.msrb.gmra.mxu3 %vm711_vm4, %v3039_v43  ;;  %2673 = vmatmul.msk.f32.vlgmr.msra.gmra.mxu0 %vm711_vm4, %v3039_v43  ;;  %v2029_v11 = vld [vmem:[%s3959_s10 + $0x3f0] sm:$0xff] }
 0x4fe   : > { %2675 = vmatmul.msk.f32.vlgmr.msra.gmra.mxu1 %vm711_vm4, %v3039_v43  ;;  %2677 = vmatmul.msk.f32.vlgmr.msra.gmra.mxu2 %vm711_vm4, %v3039_v43 }
 0x4ff   : > { %2183 = vmatpush.msrb.mxu0 %v1931_v12  ;;  %2203 = vmatpush.msrb.mxu1 %v1947_v13  ;;  %v1995_v12 = vld [vmem:[%s3959_s10 + $0x2e0] sm:$0xff] }
 0x500   : > { %2163 = vmatpush.msra.mxu3 %v1915_v14  ;;  %2223 = vmatpush.msrb.mxu2 %v1963_v21  ;;  %v2011_v13 = vld [vmem:[%s3959_s10 + $0x360] sm:$0xff]  ;;  %v1980_v14 = vld [vmem:[%s3959_s10 + $0x268] sm:$0xff] }
 0x501   : > { %2184 = vmatpush.msrb.mxu0 %v1930_v15  ;;  %2204 = vmatpush.msrb.mxu1 %v1946_v16  ;;  %v2028_v21 = vld [vmem:[%s3959_s10 + $0x3e8] sm:$0xff]  ;;  %v1994_v15 = vld [vmem:[%s3959_s10 + $0x2d8] sm:$0xff] }
 0x502   : > { %2164 = vmatpush.msra.mxu3 %v1914_v17  ;;  %2224 = vmatpush.msrb.mxu2 %v1962_v19  ;;  %v2010_v16 = vld [vmem:[%s3959_s10 + $0x358] sm:$0xff]  ;;  %v1979_v17 = vld [vmem:[%s3959_s10 + $0x260] sm:$0xff] }
 0x503   : > { %2185 = vmatpush.msrb.mxu0 %v1929_v20  ;;  %2205 = vmatpush.msrb.mxu1 %v1945_v22  ;;  %v2027_v19 = vld [vmem:[%s3959_s10 + $0x3e0] sm:$0xff]  ;;  %v1993_v20 = vld [vmem:[%s3959_s10 + $0x2d0] sm:$0xff] }
 0x504   : > { %2165 = vmatpush.msra.mxu3 %v1913_v23  ;;  %2225 = vmatpush.msrb.mxu2 %v1961_v24  ;;  %v2009_v22 = vld [vmem:[%s3959_s10 + $0x350] sm:$0xff]  ;;  %v1978_v23 = vld [vmem:[%s3959_s10 + $0x258] sm:$0xff] }
 0x505   : > { %2186 = vmatpush.msrb.mxu0 %v1928_v25  ;;  %2206 = vmatpush.msrb.mxu1 %v1944_v26  ;;  %v2026_v24 = vld [vmem:[%s3959_s10 + $0x3d8] sm:$0xff]  ;;  %v1992_v25 = vld [vmem:[%s3959_s10 + $0x2c8] sm:$0xff] }
 0x506   : > { %2166 = vmatpush.msra.mxu3 %v1912_v27  ;;  %2226 = vmatpush.msrb.mxu2 %v1960_v28  ;;  %v2008_v26 = vld [vmem:[%s3959_s10 + $0x348] sm:$0xff]  ;;  %v1977_v27 = vld [vmem:[%s3959_s10 + $0x250] sm:$0xff] }
 0x507   : > { %2187 = vmatpush.msrb.mxu0 %v1927_v29  ;;  %2207 = vmatpush.msrb.mxu1 %v1943_v30  ;;  %v2025_v28 = vld [vmem:[%s3959_s10 + $0x3d0] sm:$0xff]  ;;  %v1991_v29 = vld [vmem:[%s3959_s10 + $0x2c0] sm:$0xff] }
 0x508   : > { %2167 = vmatpush.msra.mxu3 %v1911_v31  ;;  %2227 = vmatpush.msrb.mxu2 %v1959_v32  ;;  %v2007_v30 = vld [vmem:[%s3959_s10 + $0x340] sm:$0xff]  ;;  %v1976_v31 = vld [vmem:[%s3959_s10 + $0x248] sm:$0xff] }
 0x509   : > { %2188 = vmatpush.msrb.mxu0 %v1926_v33  ;;  %2208 = vmatpush.msrb.mxu1 %v1942_v35  ;;  %v2024_v32 = vld [vmem:[%s3959_s10 + $0x3c8] sm:$0xff]  ;;  %v1990_v33 = vld [vmem:[%s3959_s10 + $0x2b8] sm:$0xff] }
 0x50a   : > { %2168 = vmatpush.msra.mxu3 %v1910_v36  ;;  %2228 = vmatpush.msrb.mxu2 %v1958_v37  ;;  %v2006_v35 = vld [vmem:[%s3959_s10 + $0x338] sm:$0xff]  ;;  %v1975_v36 = vld [vmem:[%s3959_s10 + $0x240] sm:$0xff] }
 0x50b   : > { %2189 = vmatpush.msrb.mxu0 %v1925_v38  ;;  %2209 = vmatpush.msrb.mxu1 %v1941_v39  ;;  %v2023_v37 = vld [vmem:[%s3959_s10 + $0x3c0] sm:$0xff]  ;;  %v1989_v38 = vld [vmem:[%s3959_s10 + $0x2b0] sm:$0xff] }
 0x50c   : > { %2169 = vmatpush.msra.mxu3 %v1909_v40  ;;  %2229 = vmatpush.msrb.mxu2 %v1957_v41  ;;  %v2005_v39 = vld [vmem:[%s3959_s10 + $0x330] sm:$0xff]  ;;  %v1974_v40 = vld [vmem:[%s3959_s10 + $0x238] sm:$0xff] }
 0x50d   : > { %2190 = vmatpush.msrb.mxu0 %v1924_v42  ;;  %2210 = vmatpush.msrb.mxu1 %v1940_v44  ;;  %v2022_v41 = vld [vmem:[%s3959_s10 + $0x3b8] sm:$0xff]  ;;  %v1988_v42 = vld [vmem:[%s3959_s10 + $0x2a8] sm:$0xff] }
 0x50e   : > { %2170 = vmatpush.msra.mxu3 %v1908_v45  ;;  %2230 = vmatpush.msrb.mxu2 %v1956_v46  ;;  %v2004_v44 = vld [vmem:[%s3959_s10 + $0x328] sm:$0xff]  ;;  %v1973_v45 = vld [vmem:[%s3959_s10 + $0x230] sm:$0xff] }
 0x50f   : > { %2191 = vmatpush.msrb.mxu0 %v1923_v47  ;;  %2211 = vmatpush.msrb.mxu1 %v1939_v48  ;;  %v2021_v46 = vld [vmem:[%s3959_s10 + $0x3b0] sm:$0xff]  ;;  %v1987_v47 = vld [vmem:[%s3959_s10 + $0x2a0] sm:$0xff] }
 0x510   : > { %2171 = vmatpush.msra.mxu3 %v1907_v49  ;;  %2231 = vmatpush.msrb.mxu2 %v1955_v50  ;;  %v2003_v48 = vld [vmem:[%s3959_s10 + $0x320] sm:$0xff]  ;;  %v1986_v49 = vld [vmem:[%s3959_s10 + $0x298] sm:$0xff] }
 0x511   : > { %2192 = vmatpush.msrb.mxu0 %v1922_v18  ;;  %2212 = vmatpush.msrb.mxu1 %v1938_v34  ;;  %v2002_v50 = vld [vmem:[%s3959_s10 + $0x318] sm:$0xff]  ;;  %v1972_v18 = vld [vmem:[%s3959_s10 + $0x228] sm:$0xff]  ;;  %v1985_v34 = vld [vmem:[%s3959_s10 + $0x290] sm:$0xff] }
 0x512   : > { %2172 = vmatpush.msra.mxu3 %v1906_v51  ;;  %2232 = vmatpush.msrb.mxu2 %v1954_v52  ;;  %v2001_v51 = vld [vmem:[%s3959_s10 + $0x310] sm:$0xff]  ;;  %v2020_v52 = vld [vmem:[%s3959_s10 + $0x3a8] sm:$0xff] }
 0x513   : > { %2193 = vmatpush.msrb.mxu0 %v1921_v53  ;;  %2213 = vmatpush.msrb.mxu1 %v1937_v54  ;;  %v1971_v53 = vld [vmem:[%s3959_s10 + $0x220] sm:$0xff]  ;;  %v1984_v54 = vld [vmem:[%s3959_s10 + $0x288] sm:$0xff] }
 0x514   : > { %2173 = vmatpush.msra.mxu3 %v1905_v55  ;;  %2233 = vmatpush.msrb.mxu2 %v1953_v56  ;;  %v2000_v55 = vld [vmem:[%s3959_s10 + $0x308] sm:$0xff]  ;;  %v2019_v56 = vld [vmem:[%s3959_s10 + $0x3a0] sm:$0xff] }
 0x515   : > { %2194 = vmatpush.msrb.mxu0 %v1920_v57  ;;  %2214 = vmatpush.msrb.mxu1 %v1936_v58  ;;  %v1970_v57 = vld [vmem:[%s3959_s10 + $0x218] sm:$0xff]  ;;  %v1983_v58 = vld [vmem:[%s3959_s10 + $0x280] sm:$0xff] }
 0x516   : > { %2174 = vmatpush.msra.mxu3 %v1904_v59  ;;  %2234 = vmatpush.msrb.mxu2 %v1952_v60  ;;  %v1999_v59 = vld [vmem:[%s3959_s10 + $0x300] sm:$0xff]  ;;  %v2018_v60 = vld [vmem:[%s3959_s10 + $0x398] sm:$0xff] }
 0x517   : > { %2195 = vmatpush.msrb.mxu0 %v1919_v61  ;;  %2215 = vmatpush.msrb.mxu1 %v1935_v62  ;;  %v1969_v61 = vld [vmem:[%s3959_s10 + $0x210] sm:$0xff] }
 0x518   : > { %2175 = vmatpush.msra.mxu3 %v1903_v1  ;;  %2235 = vmatpush.msrb.mxu2 %v1951_v2  ;;  %v2017_v62 = vld [vmem:[%s3959_s10 + $0x390] sm:$0xff]  ;;  %v1967_v1 = vld [vmem:[%s3959_s10 + $0x200] sm:$0xff] }
 0x519   : > { %2260 = vmatpush.msra.mxu0 %v1998_v63  ;;  %2280 = vmatpush.msra.mxu1 %v2014_v0  ;;  %v1968_v63 = vld [vmem:[%s3959_s10 + $0x208] sm:$0xff]  ;;  %v2015_v2 = vld [vmem:[%s3959_s10 + $0x380] sm:$0xff] }
 0x51a   : > { %2240 = vmatpush.msrb.mxu3 %v1982_v5  ;;  %2300 = vmatpush.msra.mxu2 %v2030_v6  ;;  %v2016_v0 = vld [vmem:[%s3959_s10 + $0x388] sm:$0xff] }
 0x51b   : > { %2261 = vmatpush.msra.mxu0 %v1997_v3  ;;  %2281 = vmatpush.msra.mxu1 %v2013_v4  ;;  %v3516_v3 = vld [vmem:[%s3958_s9] sm:$0xff] }
 0x51c   : > { %2241 = vmatpush.msrb.mxu3 %v1981_v9  ;;  %2301 = vmatpush.msra.mxu2 %v2029_v11  ;;  %v1485_v4 = vperm.slane %v3516_v3, 1  ;;  %v1486_v5 = vperm.slane %v3516_v3, 2 }
 0x51d   : > { %2262 = vmatpush.msra.mxu0 %v1996_v7  ;;  %2282 = vmatpush.msra.mxu1 %v2012_v8 }
 0x51e   : > { %2242 = vmatpush.msrb.mxu3 %v1980_v14  ;;  %2302 = vmatpush.msra.mxu2 %v2028_v21  ;;  %v2078_v21 = vld [vmem:[%s3959_s10 + $0x578] sm:$0xff] }
 0x51f   : > { %2263 = vmatpush.msra.mxu0 %v1995_v12  ;;  %2283 = vmatpush.msra.mxu1 %v2011_v13  ;;  %v2062_v12 = vld [vmem:[%s3959_s10 + $0x4f8] sm:$0xff]  ;;  %v1484_v13 = vperm.slane %v3516_v3, 0 }
 0x520   : > { %2243 = vmatpush.msrb.mxu3 %v1979_v17  ;;  %2303 = vmatpush.msra.mxu2 %v2027_v19  ;;  %v1489_v17 = vperm.slane %v3516_v3, 5 }
 0x521   : > { %2264 = vmatpush.msra.mxu0 %v1994_v15  ;;  %2284 = vmatpush.msra.mxu1 %v2010_v16  ;;  %v1487_v15 = vperm.slane %v3516_v3, 3  ;;  %v2061_v16 = vld [vmem:[%s3959_s10 + $0x4f0] sm:$0xff] }
 0x522   : > { %2244 = vmatpush.msrb.mxu3 %v1978_v23  ;;  %2304 = vmatpush.msra.mxu2 %v2026_v24 }
 0x523   : > { %2265 = vmatpush.msra.mxu0 %v1993_v20  ;;  %2285 = vmatpush.msra.mxu1 %v2009_v22  ;;  %v2077_v20 = vld [vmem:[%s3959_s10 + $0x570] sm:$0xff]  ;;  %v1490_v22 = vperm.slane %v3516_v3, 6 }
 0x524   : > { %2245 = vmatpush.msrb.mxu3 %v1977_v27  ;;  %2305 = vmatpush.msra.mxu2 %v2025_v28  ;;  %v2076_v28 = vld [vmem:[%s3959_s10 + $0x568] sm:$0xff] }
 0x525   : > { %2266 = vmatpush.msra.mxu0 %v1992_v25  ;;  %2286 = vmatpush.msra.mxu1 %v2008_v26  ;;  %v2060_v25 = vld [vmem:[%s3959_s10 + $0x4e8] sm:$0xff] }
 0x526   : > { %2246 = vmatpush.msrb.mxu3 %v1976_v31  ;;  %2306 = vmatpush.msra.mxu2 %v2024_v32  ;;  %v2046_v32 = vld [vmem:[%s3959_s10 + $0x478] sm:$0xff] }
 0x527   : > { %2267 = vmatpush.msra.mxu0 %v1991_v29  ;;  %2287 = vmatpush.msra.mxu1 %v2007_v30 }
 0x528   : > { %2247 = vmatpush.msrb.mxu3 %v1975_v36  ;;  %2307 = vmatpush.msra.mxu2 %v2023_v37  ;;  %v2059_v36 = vld [vmem:[%s3959_s10 + $0x4e0] sm:$0xff] }
 0x529   : > { %2268 = vmatpush.msra.mxu0 %v1990_v33  ;;  %2288 = vmatpush.msra.mxu1 %v2006_v35  ;;  %v2075_v37 = vld [vmem:[%s3959_s10 + $0x560] sm:$0xff] }
 0x52a   : > { %2248 = vmatpush.msrb.mxu3 %v1974_v40  ;;  %2308 = vmatpush.msra.mxu2 %v2022_v41  ;;  %v1488_v40 = vperm.slane %v3516_v3, 4 }
 0x52b   : > { %2269 = vmatpush.msra.mxu0 %v1989_v38  ;;  %2289 = vmatpush.msra.mxu1 %v2005_v39  ;;  %v2094_v39 = vld [vmem:[%s3959_s10 + $0x5f8] sm:$0xff] }
 0x52c   : > { %2249 = vmatpush.msrb.mxu3 %v1973_v45  ;;  %2309 = vmatpush.msra.mxu2 %v2021_v46  ;;  %v2058_v45 = vld [vmem:[%s3959_s10 + $0x4d8] sm:$0xff] }
 0x52d   : > { %2270 = vmatpush.msra.mxu0 %v1988_v42  ;;  %2290 = vmatpush.msra.mxu1 %v2004_v44  ;;  %v2045_v42 = vld [vmem:[%s3959_s10 + $0x470] sm:$0xff]  ;;  %v1491_v44 = vperm.slane %v3516_v3, 7  ;;  %v2074_v46 = vld [vmem:[%s3959_s10 + $0x558] sm:$0xff] }
 0x52e   : > { %2250 = vmatpush.msrb.mxu3 %v1972_v18  ;;  %2310 = vmatpush.msra.mxu2 %v2020_v52  ;;  %v2089_v3 = vld [vmem:[%s3959_s10 + $0x5d0] sm:$0xff] }
 0x52f   : > { %2271 = vmatpush.msra.mxu0 %v1987_v47  ;;  %2291 = vmatpush.msra.mxu1 %v2003_v48  ;;  %v2093_v47 = vld [vmem:[%s3959_s10 + $0x5f0] sm:$0xff] }
 0x530   : > { %2251 = vmatpush.msrb.mxu3 %v1971_v53  ;;  %2311 = vmatpush.msra.mxu2 %v2019_v56  ;;  %v2092_v53 = vld [vmem:[%s3959_s10 + $0x5e8] sm:$0xff] }
 0x531   : > { %2272 = vmatpush.msra.mxu0 %v1986_v49  ;;  %2292 = vmatpush.msra.mxu1 %v2002_v50  ;;  %v2044_v49 = vld [vmem:[%s3959_s10 + $0x468] sm:$0xff] }
 0x532   : > { %2252 = vmatpush.msrb.mxu3 %v1970_v57  ;;  %2312 = vmatpush.msra.mxu2 %v2018_v60  ;;  %v2056_v56 = vld [vmem:[%s3959_s10 + $0x4c8] sm:$0xff]  ;;  %v2042_v60 = vld [vmem:[%s3959_s10 + $0x458] sm:$0xff] }
 0x533   : > { %2273 = vmatpush.msra.mxu0 %v1985_v34  ;;  %2293 = vmatpush.msra.mxu1 %v2001_v51  ;;  %v2057_v34 = vld [vmem:[%s3959_s10 + $0x4d0] sm:$0xff]  ;;  %v2072_v57 = vld [vmem:[%s3959_s10 + $0x548] sm:$0xff] }
 0x534   : > { %2253 = vmatpush.msrb.mxu3 %v1969_v61  ;;  %2313 = vmatpush.msra.mxu2 %v2017_v62  ;;  %v2073_v51 = vld [vmem:[%s3959_s10 + $0x550] sm:$0xff]  ;;  %v2055_v61 = vld [vmem:[%s3959_s10 + $0x4c0] sm:$0xff] }
 0x535   : > { %2274 = vmatpush.msra.mxu0 %v1984_v54  ;;  %2294 = vmatpush.msra.mxu1 %v2000_v55  ;;  %v2043_v54 = vld [vmem:[%s3959_s10 + $0x460] sm:$0xff] }
 0x536   : > { %2254 = vmatpush.msrb.mxu3 %v1968_v63  ;;  %2314 = vmatpush.msra.mxu2 %v2016_v0  ;;  %v2071_v62 = vld [vmem:[%s3959_s10 + $0x540] sm:$0xff]  ;;  %v2090_v63 = vld [vmem:[%s3959_s10 + $0x5d8] sm:$0xff]  ;;  %v2041_v0 = vld [vmem:[%s3959_s10 + $0x450] sm:$0xff] }
 0x537   : > { %2275 = vmatpush.msra.mxu0 %v1983_v58  ;;  %2295 = vmatpush.msra.mxu1 %v1999_v59  ;;  %v2091_v59 = vld [vmem:[%s3959_s10 + $0x5e0] sm:$0xff] }
 0x538   : > { %2255 = vmatpush.msrb.mxu3 %v1967_v1  ;;  %2315 = vmatpush.msra.mxu2 %v2015_v2  ;;  %v2054_v1 = vld [vmem:[%s3959_s10 + $0x4b8] sm:$0xff] }
 0x539   : > { %v2070_v2 = vld [vmem:[%s3959_s10 + $0x538] sm:$0xff] }
 0x562   : > { %v1604_v6 = vpop.f32.mrf.mxu0 }
 0x563   : > { %v1605_v7 = vadd.f32 %v1604_v6, %v1485_v4  ;;  %v1624_v8 = vpop.f32.mrf.mxu1  ;;  %v2040_v4 = vld [vmem:[%s3959_s10 + $0x448] sm:$0xff]  ;;  %v2069_v6 = vld [vmem:[%s3959_s10 + $0x530] sm:$0xff] }
 0x564   : > { %v1625_v9 = vadd.f32 %v1624_v8, %v1486_v5  ;;  %v2053_v5 = vld [vmem:[%s3959_s10 + $0x4b0] sm:$0xff]  ;;  %v2039_v8 = vld [vmem:[%s3959_s10 + $0x440] sm:$0xff] }
 0x565   : > { %v1888_v11 = vmax.f32 %v1605_v7, 0.0  ;;  %v2088_v7 = vld [vmem:[%s3959_s10 + $0x5c8] sm:$0xff] }
 0x566   : > { %v1889_v14 = vmax.f32 %v1625_v9, 0.0  ;;  %v2052_v9 = vld [vmem:[%s3959_s10 + $0x4a8] sm:$0xff] }
 0x567   : > { %2196 = vmatmul.f32.vlgmr.msrb.gmra.mxu0 %v1888_v11  ;;  %v2068_v11 = vld [vmem:[%s3959_s10 + $0x528] sm:$0xff] }
 0x568   : > { %2216 = vmatmul.f32.vlgmr.msrb.gmra.mxu1 %v1889_v14  ;;  %2340 = vmatpush.msrb.mxu0 %v2062_v12  ;;  %v1584_v19 = vpop.f32.mrf.mxu3  ;;  %v3640_v12 = vld [vmem:[%s3958_s9 + $0x8] sm:$0xff]  ;;  %v2038_v14 = vld [vmem:[%s3959_s10 + $0x438] sm:$0xff] }
 0x569   : > { %2360 = vmatpush.msrb.mxu1 %v2078_v21  ;;  %v1585_v23 = vadd.f32 %v1584_v19, %v1484_v13  ;;  %v1644_v24 = vpop.f32.mrf.mxu2  ;;  %v2087_v13 = vld [vmem:[%s3959_s10 + $0x5c0] sm:$0xff]  ;;  %v1493_v19 = vperm.slane %v3640_v12, 1 }
 0x56a   : > { %v1645_v26 = vadd.f32 %v1644_v24, %v1487_v15  ;;  %2341 = vmatpush.msrb.mxu0 %v2061_v16  ;;  %v1684_v27 = vpop.f32.mrf.mxu0  ;;  %v2051_v21 = vld [vmem:[%s3959_s10 + $0x4a0] sm:$0xff]  ;;  %v2086_v16 = vld [vmem:[%s3959_s10 + $0x5b8] sm:$0xff]  ;;  %v1494_v24 = vperm.slane %v3640_v12, 2 }
 0x56b   : > { %v1887_v29 = vmax.f32 %v1585_v23, 0.0  ;;  %2361 = vmatpush.msrb.mxu1 %v2077_v20  ;;  %v1685_v30 = vadd.f32 %v1684_v27, %v1489_v17  ;;  %v1704_v31 = vpop.f32.mrf.mxu1  ;;  %v2067_v15 = vld [vmem:[%s3959_s10 + $0x520] sm:$0xff]  ;;  %v2037_v17 = vld [vmem:[%s3959_s10 + $0x430] sm:$0xff]  ;;  %v2050_v20 = vld [vmem:[%s3959_s10 + $0x498] sm:$0xff] }
 0x56c   : > { %v1890_v33 = vmax.f32 %v1645_v26, 0.0  ;;  %v1705_v35 = vadd.f32 %v1704_v31, %v1490_v22  ;;  %2342 = vmatpush.msrb.mxu0 %v2060_v25  ;;  %v2066_v22 = vld [vmem:[%s3959_s10 + $0x518] sm:$0xff]  ;;  %v2085_v25 = vld [vmem:[%s3959_s10 + $0x5b0] sm:$0xff]  ;;  %v2036_v26 = vld [vmem:[%s3959_s10 + $0x428] sm:$0xff] }
 0x56d   : > { %v1892_v38 = vmax.f32 %v1685_v30, 0.0  ;;  %2362 = vmatpush.msrb.mxu1 %v2076_v28  ;;  %2176 = vmatmul.f32.vlgmr.msra.gmra.mxu3 %v1887_v29  ;;  %v2049_v28 = vld [vmem:[%s3959_s10 + $0x490] sm:$0xff]  ;;  %v2084_v30 = vld [vmem:[%s3959_s10 + $0x5a8] sm:$0xff]  ;;  %v2035_v31 = vld [vmem:[%s3959_s10 + $0x420] sm:$0xff] }
 0x56e   : > { %v1893_v41 = vmax.f32 %v1705_v35, 0.0  ;;  %2236 = vmatmul.f32.vlgmr.msrb.gmra.mxu2 %v1890_v33  ;;  %2320 = vmatpush.msra.mxu3 %v2046_v32  ;;  %v2065_v29 = vld [vmem:[%s3959_s10 + $0x510] sm:$0xff]  ;;  %v2048_v33 = vld [vmem:[%s3959_s10 + $0x488] sm:$0xff] }
 0x56f   : > { %2343 = vmatpush.msrb.mxu0 %v2059_v36  ;;  %2363 = vmatpush.msrb.mxu1 %v2075_v37  ;;  %v2064_v35 = vld [vmem:[%s3959_s10 + $0x508] sm:$0xff]  ;;  %v2083_v37 = vld [vmem:[%s3959_s10 + $0x5a0] sm:$0xff] }
 0x570   : > { %2380 = vmatpush.msrb.mxu2 %v2094_v39  ;;  %2276 = vmatmul.f32.vlgmr.msra.gmra.mxu0 %v1892_v38  ;;  %v1664_v48 = vpop.f32.mrf.mxu3  ;;  %v2034_v38 = vld [vmem:[%s3959_s10 + $0x418] sm:$0xff]  ;;  %v2047_v39 = vld [vmem:[%s3959_s10 + $0x480] sm:$0xff] }
 0x571   : > { %2296 = vmatmul.f32.vlgmr.msra.gmra.mxu1 %v1893_v41  ;;  %2321 = vmatpush.msra.mxu3 %v2045_v42  ;;  %v1665_v50 = vadd.f32 %v1664_v48, %v1488_v40  ;;  %v1724_v18 = vpop.f32.mrf.mxu2  ;;  %v2063_v40 = vld [vmem:[%s3959_s10 + $0x500] sm:$0xff]  ;;  %v1492_v41 = vperm.slane %v3640_v12, 0  ;;  %v2082_v42 = vld [vmem:[%s3959_s10 + $0x598] sm:$0xff] }
 0x572   : > { %2344 = vmatpush.msrb.mxu0 %v2058_v45  ;;  %2364 = vmatpush.msrb.mxu1 %v2074_v46  ;;  %v1725_v52 = vadd.f32 %v1724_v18, %v1491_v44  ;;  %v1764_v23 = vpop.f32.mrf.mxu0  ;;  %v1495_v46 = vperm.slane %v3640_v12, 3  ;;  %v2033_v18 = vld [vmem:[%s3959_s10 + $0x410] sm:$0xff] }
 0x573   : > { %2381 = vmatpush.msrb.mxu2 %v2093_v47  ;;  %v1891_v55 = vmax.f32 %v1665_v50, 0.0  ;;  %2322 = vmatpush.msra.mxu3 %v2044_v49  ;;  %v1784_v27 = vpop.f32.mrf.mxu1  ;;  %v1765_v32 = vadd.f32 %v1764_v23, %v1493_v19  ;;  %v2126_v47 = vld [vmem:[%s3959_s10 + $0x6f8] sm:$0xff]  ;;  %v2135_v19 = vld [vmem:[%s3959_s10 + $0x740] sm:$0xff] }
 0x574   : > { %v1894_v58 = vmax.f32 %v1725_v52, 0.0  ;;  %2345 = vmatpush.msrb.mxu0 %v2057_v34  ;;  %2365 = vmatpush.msrb.mxu1 %v2073_v51  ;;  %v1785_v36 = vadd.f32 %v1784_v27, %v1494_v24  ;;  %v2142_v50 = vld [vmem:[%s3959_s10 + $0x778] sm:$0xff]  ;;  %v2081_v34 = vld [vmem:[%s3959_s10 + $0x590] sm:$0xff] }
 0x575   : > { %2382 = vmatpush.msrb.mxu2 %v2092_v53  ;;  %2323 = vmatpush.msra.mxu3 %v2043_v54  ;;  %v1896_v44 = vmax.f32 %v1765_v32, 0.0  ;;  %v2125_v51 = vld [vmem:[%s3959_s10 + $0x6f0] sm:$0xff]  ;;  %v2032_v54 = vld [vmem:[%s3959_s10 + $0x408] sm:$0xff]  ;;  %v2118_v23 = vld [vmem:[%s3959_s10 + $0x6b8] sm:$0xff] }
 0x576   : > { %2346 = vmatpush.msrb.mxu0 %v2056_v56  ;;  %2366 = vmatpush.msrb.mxu1 %v2072_v57  ;;  %v1897_v48 = vmax.f32 %v1785_v36, 0.0  ;;  %v2141_v53 = vld [vmem:[%s3959_s10 + $0x770] sm:$0xff]  ;;  %v2080_v56 = vld [vmem:[%s3959_s10 + $0x588] sm:$0xff]  ;;  %v2134_v24 = vld [vmem:[%s3959_s10 + $0x738] sm:$0xff] }
 0x577   : > { %2383 = vmatpush.msrb.mxu2 %v2091_v59  ;;  %2256 = vmatmul.f32.vlgmr.msrb.gmra.mxu3 %v1891_v55  ;;  %v2124_v57 = vld [vmem:[%s3959_s10 + $0x6e8] sm:$0xff]  ;;  %v2031_v59 = vld [vmem:[%s3959_s10 + $0x400] sm:$0xff]  ;;  %v2117_v27 = vld [vmem:[%s3959_s10 + $0x6b0] sm:$0xff] }
 0x578   : > { %2316 = vmatmul.f32.vlgmr.msra.gmra.mxu2 %v1894_v58  ;;  %2324 = vmatpush.msra.mxu3 %v2042_v60  ;;  %v1744_v45 = vpop.f32.mrf.mxu3  ;;  %v2140_v58 = vld [vmem:[%s3959_s10 + $0x768] sm:$0xff]  ;;  %v2079_v60 = vld [vmem:[%s3959_s10 + $0x580] sm:$0xff] }
 0x579   : > { %2347 = vmatpush.msrb.mxu0 %v2055_v61  ;;  %2367 = vmatpush.msrb.mxu1 %v2071_v62  ;;  %v1804_v49 = vpop.f32.mrf.mxu2  ;;  %v1745_v52 = vadd.f32 %v1744_v45, %v1492_v41  ;;  %v2110_v62 = vld [vmem:[%s3959_s10 + $0x678] sm:$0xff]  ;;  %v2132_v32 = vld [vmem:[%s3959_s10 + $0x728] sm:$0xff]  ;;  %v2115_v36 = vld [vmem:[%s3959_s10 + $0x6a0] sm:$0xff]  ;;  %v1498_v45 = vperm.slane %v3640_v12, 6 }
 0x57a   : > { %2384 = vmatpush.msrb.mxu2 %v2090_v63  ;;  %2325 = vmatpush.msra.mxu3 %v2041_v0  ;;  %v1805_v55 = vadd.f32 %v1804_v49, %v1495_v46  ;;  %v2123_v0 = vld [vmem:[%s3959_s10 + $0x6e0] sm:$0xff]  ;;  %v2114_v41 = vld [vmem:[%s3959_s10 + $0x698] sm:$0xff]  ;;  %v2149_v46 = vld [vmem:[%s3959_s10 + $0x7b0] sm:$0xff] }
 0x57b   : > { %2348 = vmatpush.msrb.mxu0 %v2054_v1  ;;  %2368 = vmatpush.msrb.mxu1 %v2070_v2  ;;  %v1895_v61 = vmax.f32 %v1745_v52, 0.0  ;;  %v2139_v1 = vld [vmem:[%s3959_s10 + $0x760] sm:$0xff]  ;;  %v2158_v2 = vld [vmem:[%s3959_s10 + $0x7f8] sm:$0xff]  ;;  %v2113_v49 = vld [vmem:[%s3959_s10 + $0x690] sm:$0xff] }
 0x57c   : > { %2385 = vmatpush.msrb.mxu2 %v2089_v3  ;;  %2326 = vmatpush.msra.mxu3 %v2040_v4  ;;  %v1898_v63 = vmax.f32 %v1805_v55, 0.0  ;;  %v2109_v3 = vld [vmem:[%s3959_s10 + $0x670] sm:$0xff]  ;;  %v2122_v4 = vld [vmem:[%s3959_s10 + $0x6d8] sm:$0xff]  ;;  %v2112_v52 = vld [vmem:[%s3959_s10 + $0x688] sm:$0xff] }
 0x57d   : > { %2349 = vmatpush.msrb.mxu0 %v2053_v5  ;;  %2369 = vmatpush.msrb.mxu1 %v2069_v6  ;;  %v2138_v5 = vld [vmem:[%s3959_s10 + $0x758] sm:$0xff]  ;;  %v2157_v6 = vld [vmem:[%s3959_s10 + $0x7f0] sm:$0xff]  ;;  %v2147_v55 = vld [vmem:[%s3959_s10 + $0x7a0] sm:$0xff] }
 0x57e   : > { %2386 = vmatpush.msrb.mxu2 %v2088_v7  ;;  %2327 = vmatpush.msra.mxu3 %v2039_v8  ;;  %v2108_v7 = vld [vmem:[%s3959_s10 + $0x668] sm:$0xff]  ;;  %v2121_v8 = vld [vmem:[%s3959_s10 + $0x6d0] sm:$0xff] }
 0x57f   : > { %2350 = vmatpush.msrb.mxu0 %v2052_v9  ;;  %2370 = vmatpush.msrb.mxu1 %v2068_v11  ;;  %v2137_v9 = vld [vmem:[%s3959_s10 + $0x750] sm:$0xff]  ;;  %v2156_v11 = vld [vmem:[%s3959_s10 + $0x7e8] sm:$0xff] }
 0x580   : > { %2387 = vmatpush.msrb.mxu2 %v2087_v13  ;;  %2328 = vmatpush.msra.mxu3 %v2038_v14  ;;  %v2107_v13 = vld [vmem:[%s3959_s10 + $0x660] sm:$0xff]  ;;  %v2120_v14 = vld [vmem:[%s3959_s10 + $0x6c8] sm:$0xff] }
 0x581   : > { %2351 = vmatpush.msrb.mxu0 %v2051_v21  ;;  %2371 = vmatpush.msrb.mxu1 %v2067_v15  ;;  %v2136_v21 = vld [vmem:[%s3959_s10 + $0x748] sm:$0xff]  ;;  %v2155_v15 = vld [vmem:[%s3959_s10 + $0x7e0] sm:$0xff] }
 0x582   : > { %2388 = vmatpush.msrb.mxu2 %v2086_v16  ;;  %2329 = vmatpush.msra.mxu3 %v2037_v17  ;;  %v2106_v16 = vld [vmem:[%s3959_s10 + $0x658] sm:$0xff]  ;;  %v2119_v17 = vld [vmem:[%s3959_s10 + $0x6c0] sm:$0xff] }
 0x583   : > { %2352 = vmatpush.msrb.mxu0 %v2050_v20  ;;  %2372 = vmatpush.msrb.mxu1 %v2066_v22  ;;  %v2154_v20 = vld [vmem:[%s3959_s10 + $0x7d8] sm:$0xff]  ;;  %v2105_v22 = vld [vmem:[%s3959_s10 + $0x650] sm:$0xff] }
 0x584   : > { %2389 = vmatpush.msrb.mxu2 %v2085_v25  ;;  %2330 = vmatpush.msra.mxu3 %v2036_v26  ;;  %v2153_v25 = vld [vmem:[%s3959_s10 + $0x7d0] sm:$0xff]  ;;  %v2104_v26 = vld [vmem:[%s3959_s10 + $0x648] sm:$0xff] }
 0x585   : > { %2353 = vmatpush.msrb.mxu0 %v2049_v28  ;;  %2373 = vmatpush.msrb.mxu1 %v2065_v29  ;;  %v2133_v28 = vld [vmem:[%s3959_s10 + $0x730] sm:$0xff]  ;;  %v2152_v29 = vld [vmem:[%s3959_s10 + $0x7c8] sm:$0xff] }
 0x586   : > { %2390 = vmatpush.msrb.mxu2 %v2084_v30  ;;  %2331 = vmatpush.msra.mxu3 %v2035_v31  ;;  %v2103_v30 = vld [vmem:[%s3959_s10 + $0x640] sm:$0xff]  ;;  %v2116_v31 = vld [vmem:[%s3959_s10 + $0x6a8] sm:$0xff] }
 0x587   : > { %2354 = vmatpush.msrb.mxu0 %v2048_v33  ;;  %2374 = vmatpush.msrb.mxu1 %v2064_v35  ;;  %v2151_v33 = vld [vmem:[%s3959_s10 + $0x7c0] sm:$0xff]  ;;  %v2102_v35 = vld [vmem:[%s3959_s10 + $0x638] sm:$0xff] }
 0x588   : > { %2391 = vmatpush.msrb.mxu2 %v2083_v37  ;;  %2332 = vmatpush.msra.mxu3 %v2034_v38  ;;  %v2131_v37 = vld [vmem:[%s3959_s10 + $0x720] sm:$0xff]  ;;  %v2150_v38 = vld [vmem:[%s3959_s10 + $0x7b8] sm:$0xff] }
 0x589   : > { %2355 = vmatpush.msrb.mxu0 %v2047_v39  ;;  %2375 = vmatpush.msrb.mxu1 %v2063_v40  ;;  %v2101_v39 = vld [vmem:[%s3959_s10 + $0x630] sm:$0xff]  ;;  %v1497_v40 = vperm.slane %v3640_v12, 5 }
 0x58a   : > { %2392 = vmatpush.msrb.mxu2 %v2082_v42  ;;  %2356 = vmatmul.f32.vlgmr.msrb.gmra.mxu0 %v1896_v44  ;;  %v2130_v42 = vld [vmem:[%s3959_s10 + $0x718] sm:$0xff]  ;;  %v1844_v44 = vpop.f32.mrf.mxu0 }
 0x58b   : > { %2376 = vmatmul.f32.vlgmr.msrb.gmra.mxu1 %v1897_v48  ;;  %2420 = vmatpush.msra.mxu0 %v2126_v47  ;;  %v2100_v47 = vld [vmem:[%s3959_s10 + $0x628] sm:$0xff]  ;;  %v1864_v48 = vpop.f32.mrf.mxu1 }
 0x58c   : > { %2440 = vmatpush.msra.mxu1 %v2142_v50  ;;  %2333 = vmatpush.msra.mxu3 %v2033_v18  ;;  %v2129_v50 = vld [vmem:[%s3959_s10 + $0x710] sm:$0xff]  ;;  %v2148_v18 = vld [vmem:[%s3959_s10 + $0x7a8] sm:$0xff] }
 0x58d   : > { %2393 = vmatpush.msrb.mxu2 %v2081_v34  ;;  %2421 = vmatpush.msra.mxu0 %v2125_v51  ;;  %v2099_v34 = vld [vmem:[%s3959_s10 + $0x620] sm:$0xff]  ;;  %v1845_v51 = vadd.f32 %v1844_v44, %v1497_v40 }
 0x58e   : > { %2441 = vmatpush.msra.mxu1 %v2141_v53  ;;  %2334 = vmatpush.msra.mxu3 %v2032_v54  ;;  %v2128_v53 = vld [vmem:[%s3959_s10 + $0x708] sm:$0xff]  ;;  %v1865_v54 = vadd.f32 %v1864_v48, %v1498_v45 }
 0x58f   : > { %2394 = vmatpush.msrb.mxu2 %v2080_v56  ;;  %2422 = vmatpush.msra.mxu0 %v2124_v57  ;;  %v2098_v56 = vld [vmem:[%s3959_s10 + $0x618] sm:$0xff]  ;;  %v1496_v57 = vperm.slane %v3640_v12, 4 }
 0x590   : > { %2442 = vmatpush.msra.mxu1 %v2140_v58  ;;  %2335 = vmatpush.msra.mxu3 %v2031_v59  ;;  %v2111_v58 = vld [vmem:[%s3959_s10 + $0x680] sm:$0xff] }
 0x591   : > { %2395 = vmatpush.msrb.mxu2 %v2079_v60  ;;  %2336 = vmatmul.f32.vlgmr.msra.gmra.mxu3 %v1895_v61  ;;  %v2127_v59 = vld [vmem:[%s3959_s10 + $0x700] sm:$0xff]  ;;  %v1824_v60 = vpop.f32.mrf.mxu3  ;;  %v1499_v61 = vperm.slane %v3640_v12, 7  ;;  %v2145_v12 = vld [vmem:[%s3959_s10 + $0x790] sm:$0xff] }
 0x592   : > { %2396 = vmatmul.f32.vlgmr.msrb.gmra.mxu2 %v1898_v63  ;;  %2400 = vmatpush.msrb.mxu3 %v2110_v62  ;;  %v2146_v62 = vld [vmem:[%s3959_s10 + $0x798] sm:$0xff]  ;;  %v1900_v63 = vmax.f32 %v1845_v51, 0.0 }
 0x593   : > { %2423 = vmatpush.msra.mxu0 %v2123_v0  ;;  %2443 = vmatpush.msra.mxu1 %v2139_v1  ;;  %v1884_v0 = vpop.f32.mrf.mxu2  ;;  %v2097_v1 = vld [vmem:[%s3959_s10 + $0x610] sm:$0xff] }
 0x594   : > { %2460 = vmatpush.msra.mxu2 %v2158_v2  ;;  %2401 = vmatpush.msrb.mxu3 %v2109_v3  ;;  %v1901_v2 = vmax.f32 %v1865_v54, 0.0  ;;  %v1825_v3 = vadd.f32 %v1824_v60, %v1496_v57 }
 0x595   : > { %2424 = vmatpush.msra.mxu0 %v2122_v4  ;;  %2444 = vmatpush.msra.mxu1 %v2138_v5  ;;  %v2096_v4 = vld [vmem:[%s3959_s10 + $0x608] sm:$0xff]  ;;  %v1885_v5 = vadd.f32 %v1884_v0, %v1499_v61 }
 0x596   : > { %2461 = vmatpush.msra.mxu2 %v2157_v6  ;;  %2402 = vmatpush.msrb.mxu3 %v2108_v7  ;;  %v2144_v6 = vld [vmem:[%s3959_s10 + $0x788] sm:$0xff]  ;;  %v2095_v7 = vld [vmem:[%s3959_s10 + $0x600] sm:$0xff] }
 0x597   : > { %2425 = vmatpush.msra.mxu0 %v2121_v8  ;;  %2445 = vmatpush.msra.mxu1 %v2137_v9  ;;  %v2143_v8 = vld [vmem:[%s3959_s10 + $0x780] sm:$0xff]  ;;  %v1899_v9 = vmax.f32 %v1825_v3, 0.0 }
 0x598   : > { %2462 = vmatpush.msra.mxu2 %v2156_v11  ;;  %2403 = vmatpush.msrb.mxu3 %v2107_v13  ;;  %v1902_v11 = vmax.f32 %v1885_v5, 0.0  ;;  %v3926_v13 = vld [vmem:[%s3961_s12] sm:$0xff] }
 0x599   : > { %2426 = vmatpush.msra.mxu0 %v2120_v14  ;;  %2446 = vmatpush.msra.mxu1 %v2136_v21  ;;  %v2159_v14 = vperm.slane %v3926_v13, 6 }
 0x59a   : > { %2463 = vmatpush.msra.mxu2 %v2155_v15  ;;  %2404 = vmatpush.msrb.mxu3 %v2106_v16 }
 0x59b   : > { %2427 = vmatpush.msra.mxu0 %v2119_v17  ;;  %2447 = vmatpush.msra.mxu1 %v2135_v19 }
 0x59c   : > { %2464 = vmatpush.msra.mxu2 %v2154_v20  ;;  %2405 = vmatpush.msrb.mxu3 %v2105_v22 }
 0x59d   : > { %2428 = vmatpush.msra.mxu0 %v2118_v23  ;;  %2448 = vmatpush.msra.mxu1 %v2134_v24 }
 0x59e   : > { %2465 = vmatpush.msra.mxu2 %v2153_v25  ;;  %2406 = vmatpush.msrb.mxu3 %v2104_v26 }
 0x59f   : > { %2429 = vmatpush.msra.mxu0 %v2117_v27  ;;  %2449 = vmatpush.msra.mxu1 %v2133_v28 }
 0x5a0   : > { %2466 = vmatpush.msra.mxu2 %v2152_v29  ;;  %2407 = vmatpush.msrb.mxu3 %v2103_v30 }
 0x5a1   : > { %2430 = vmatpush.msra.mxu0 %v2116_v31  ;;  %2450 = vmatpush.msra.mxu1 %v2132_v32 }
 0x5a2   : > { %2467 = vmatpush.msra.mxu2 %v2151_v33  ;;  %2408 = vmatpush.msrb.mxu3 %v2102_v35 }
 0x5a3   : > { %2431 = vmatpush.msra.mxu0 %v2115_v36  ;;  %2451 = vmatpush.msra.mxu1 %v2131_v37 }
 0x5a4   : > { %2468 = vmatpush.msra.mxu2 %v2150_v38  ;;  %2409 = vmatpush.msrb.mxu3 %v2101_v39 }
 0x5a5   : > { %2432 = vmatpush.msra.mxu0 %v2114_v41  ;;  %2452 = vmatpush.msra.mxu1 %v2130_v42 }
 0x5a6   : > { %2469 = vmatpush.msra.mxu2 %v2149_v46  ;;  %2410 = vmatpush.msrb.mxu3 %v2100_v47 }
 0x5a7   : > { %2433 = vmatpush.msra.mxu0 %v2113_v49  ;;  %2453 = vmatpush.msra.mxu1 %v2129_v50 }
 0x5a8   : > { %2470 = vmatpush.msra.mxu2 %v2148_v18  ;;  %2411 = vmatpush.msrb.mxu3 %v2099_v34 }
 0x5a9   : > { %2434 = vmatpush.msra.mxu0 %v2112_v52  ;;  %2454 = vmatpush.msra.mxu1 %v2128_v53 }
 0x5aa   : > { %2471 = vmatpush.msra.mxu2 %v2147_v55  ;;  %2412 = vmatpush.msrb.mxu3 %v2098_v56 }
 0x5ab   : > { %2435 = vmatpush.msra.mxu0 %v2111_v58  ;;  %2455 = vmatpush.msra.mxu1 %v2127_v59 }
 0x5ac   : > { %2472 = vmatpush.msra.mxu2 %v2146_v62  ;;  %2436 = vmatmul.f32.vlgmr.msra.gmra.mxu0 %v1900_v63  ;;  %v2503_v63 = vperm.slane %v3926_v13, 4 }
 0x5ad   : > { %2456 = vmatmul.f32.vlgmr.msra.gmra.mxu1 %v1901_v2  ;;  %2413 = vmatpush.msrb.mxu3 %v2097_v1  ;;  %v2505_v2 = vperm.slane %v3926_v13, 5 }
 0x5ae   : > { %2473 = vmatpush.msra.mxu2 %v2145_v12 }
 0x5af   : > { %2414 = vmatpush.msrb.mxu3 %v2096_v4 }
 0x5b0   : > { %2474 = vmatpush.msra.mxu2 %v2144_v6  ;;  %v2697_v6 = vld [vmem:[%s3961_s12 + $0x8] ss:$0 sm:$0xff] }
 0x5b1   : > { %2415 = vmatpush.msrb.mxu3 %v2095_v7 }
 0x5b2   : > { %2475 = vmatpush.msra.mxu2 %v2143_v8  ;;  %2416 = vmatmul.f32.vlgmr.msrb.gmra.mxu3 %v1899_v9 }
 0x5b3   : > { %2476 = vmatmul.f32.vlgmr.msra.gmra.mxu2 %v1902_v11 }
 0x5e4   : > { %v2197_v16 = vpop.f32.mrf.mxu0 }
 0x5e5   : > { %v2217_v19 = vpop.f32.mrf.mxu1 }
 0x5ed   : > { %v2277_v26 = vpop.f32.mrf.mxu0 }
 0x5ee   : > { %v2297_v28 = vpop.f32.mrf.mxu1 }
 0x5f0   : > { %v2177_v21 = vpop.f32.mrf.mxu3 }
 0x5f1   : > { %v2178_v15 = vadd.f32 %v2177_v21, %v2159_v14  ;;  %v2237_v22 = vpop.f32.mrf.mxu2 }
 0x5f3   : > { %v2198_v17 = vadd.f32 %v2197_v16, %v2178_v15 }
 0x5f5   : > { %v2218_v20 = vadd.f32 %v2217_v19, %v2198_v17 }
 0x5f7   : > { %v2238_v23 = vadd.f32 %v2237_v22, %v2218_v20 }
 0x5fa   : > { %v2257_v24 = vpop.f32.mrf.mxu3 }
 0x5fb   : > { %v2258_v25 = vadd.f32 %v2257_v24, %v2238_v23  ;;  %v2317_v30 = vpop.f32.mrf.mxu2 }
 0x5fd   : > { %v2278_v27 = vadd.f32 %v2277_v26, %v2258_v25 }
 0x5ff   : > { %v2298_v29 = vadd.f32 %v2297_v28, %v2278_v27 }
 0x601   : > { %v2318_v32 = vadd.f32 %v2317_v30, %v2298_v29 }
 0x607   : > { %v2357_v35 = vpop.f32.mrf.mxu0 }
 0x608   : > { %v2377_v37 = vpop.f32.mrf.mxu1 }
 0x614   : > { %v2337_v31 = vpop.f32.mrf.mxu3 }
 0x615   : > { %v2338_v33 = vadd.f32 %v2337_v31, %v2318_v32  ;;  %v2397_v39 = vpop.f32.mrf.mxu2 }
 0x617   : > { %v2358_v36 = vadd.f32 %v2357_v35, %v2338_v33 }
 0x619   : > { %v2378_v38 = vadd.f32 %v2377_v37, %v2358_v36 }
 0x61b   : > { %v2398_v40 = vadd.f32 %v2397_v39, %v2378_v38 }
 0x629   : > { %v2437_v44 = vpop.f32.mrf.mxu0 }
 0x62a   : > { %v2457_v46 = vpop.f32.mrf.mxu1 }
 0x635   : > { %v2417_v41 = vpop.f32.mrf.mxu3 }
 0x636   : > { %v2418_v42 = vadd.f32 %v2417_v41, %v2398_v40  ;;  %v2477_v48 = vpop.f32.mrf.mxu2 }
 0x638   : > { %v2438_v45 = vadd.f32 %v2437_v44, %v2418_v42 }
 0x63a   : > { %v2458_v47 = vadd.f32 %v2457_v46, %v2438_v45 }
 0x63c   : > { %v2478_v49 = vadd.f32 %v2477_v48, %v2458_v47 }
 0x63e   : > { %v2480_v50 = vadd.f32 %v2478_v49, %v3039_v43 }
 0x640   : > { %v2481_v18 = vsel %vm711_vm4, %v2480_v50, 0.0 }
 0x641   : > { %2482 = vadd.xlane.f32.xlu0 %v2481_v18 }
 0x6b4   : > { %v2483_v34 = vpop.xlane.xlu0 %2482 }
 0x6b5   : > { %v2484_v51 = vmul.f32 %v2483_v34, %v2976_v10 }
 0x6b7   : > { %v2485_v52 = vsub.f32 %v2480_v50, %v2484_v51 }
 0x6b9   : > { %v2486_v53 = vmul.f32 %v2485_v52, %v2485_v52 }
 0x6bb   : > { %v2487_v54 = vsel %vm711_vm4, %v2486_v53, 0.0 }
 0x6bc   : > { %2488 = vadd.xlane.f32.xlu1 %v2487_v54 }
 0x72f   : > { %v2489_v55 = vpop.xlane.xlu1 %2488 }
 0x730   : > { %v2490_v56 = vmul.f32 %v2489_v55, %v2976_v10  ;;  %v2507_v10 = vperm.slane %v3926_v13, 7 }
 0x732   : > { %v2491_v57 = vadd.f32 1e-05, %v2490_v56 }
 0x734   : > { %2734 = vrsqrt.f32 %v2491_v57  ;;  %vm2498_vm6 = vweird.f32 %v2491_v57 }
 0x73a   : > { %v2735_v58 = vpop.eup %2734 }
 0x73b   : > { %v2493_v59 = vmul.f32 %v2735_v58, %v2491_v57  ;;  %vm2499_vm2 = vweird.f32 %v2735_v58 }
 0x73c   : > { %vm2500_vm7 = vmor %vm2498_vm6, %vm2499_vm2 }
 0x73d   : > { %v2494_v60 = vmul.f32 %v2735_v58, %v2493_v59 }
 0x73f   : > { %v2495_v43 = vmul.f32 0.5, %v2494_v60 }
 0x741   : > { %v2496_v61 = vsub.f32 1.5, %v2495_v43 }
 0x743   : > { %v2497_v62 = vmul.f32 %v2735_v58, %v2496_v61 }
 0x745   : > { %v2501_v0 = vsel %vm2500_vm7, %v2735_v58, %v2497_v62 }
 0x746   : > { %v2502_v1 = vmul.f32 %v2501_v0, %v2485_v52 }
 0x748   : > { %v2504_v12 = vmul.f32 %v2503_v63, %v2502_v1 }
 0x74a   : > { %v2506_v3 = vadd.f32 %v2505_v2, %v2504_v12 }
 0x74c   : > { %v2508_v4 = vmul.f32 %v2507_v10, %v2506_v3 }
 0x74e   : > { %v2509_v5 = vsel %vm711_vm4, %v2508_v4, 0.0 }
 0x74f   : > { %2510 = vadd.xlane.f32.xlu2 %v2509_v5 }
 0x7c2   : > { %v2511_v7 = vpop.xlane.xlu2 %2510 }
 0x7c3   : > { %v2513_v8 = vadd.f32 %v2697_v6, %v2511_v7 }
 0x7c5   : > { %2515 = vst.msk [vmem:[%s476_s28] sm:$0xff] %vm2514_vm8, %v2513_v8 }
 0x7c6 PF: > { %s23_s25 = sadd.s32 1, %s2743_s25  }
 0x7c7   : > { %p20_p5 = scmp.ge.s32.totalorder %s23_s25, 4  }
 0x7c9   :  { %22 = sbr.rel (!%p20_p5) target bundleno = 1 (0x1), region = 108 }

</bundles_post_ra>
